<compile_context>
chip_gen: v5e
topology: v5e:2x2
jax: 0.10.0
libtpu: 0.0.40
codegen_flags: <defaults>
</compile_context>

<pallas_src>
import functools

import numpy as np

import jax
import jax.numpy as jnp
from jax.experimental import pallas as pl
from jax.experimental.pallas import tpu as pltpu


# ----------------------------- Pallas kernel --------------------------------

def _disphead_kernel(*refs, pack, scale, mxu_dtype):
    """Fused 3x3 conv (padding=1) + bias + sigmoid [+ bilinear upsample].

    refs (upsample): w, b, uh, uwt, x, o, a_top, a_mid, a_bot
    refs (scale==1): w, b, x, o, a_top, a_mid, a_bot

    w   : SMEM (C*9,)            conv1 weights, flattened (c, kh, kw), f32
    b   : SMEM (1,)              conv1 bias, f32
    uh  : VMEM (Ho, H)           row-interp matrix (rows pre-permuted if pack>1)
    uwt : VMEM (W, Wo)           column-interp matrix, transposed
    x   : VMEM (1, TC, H, W)     one channel block of one batch element
    o   : VMEM (1, Ho/pack, Wo*pack)   lane-dense packed output
    a_* : VMEM (H, W) f32        per-kernel-row accumulators (scratch)
    """
    upsample = scale > 1
    if upsample:
        (w_ref, b_ref, uh_ref, uwt_ref, x_ref, o_ref,
         a_top_ref, a_mid_ref, a_bot_ref) = refs
    else:
        (w_ref, b_ref, x_ref, o_ref,
         a_top_ref, a_mid_ref, a_bot_ref) = refs
        uh_ref = uwt_ref = None

    TC, H, W = x_ref.shape[1], x_ref.shape[2], x_ref.shape[3]
    cblk = pl.program_id(1)

    @pl.when(cblk == 0)
    def _init():
        a_top_ref[...] = jnp.zeros_like(a_top_ref)
        a_mid_ref[...] = jnp.zeros_like(a_mid_ref)
        a_bot_ref[...] = jnp.zeros_like(a_bot_ref)

    # Border masks for the column (lane) shifts, hoisted out of the channel loop.
    col = jax.lax.broadcasted_iota(jnp.int32, (H, W), 1)
    left_ok = col >= 1            # tap x[:, j-1] valid
    right_ok = col <= W - 2       # tap x[:, j+1] valid

    w_base = cblk * (TC * 9)      # this block's offset into the flat weights

    def accumulate(c, carry):
        a_top, a_mid, a_bot = carry
        p = x_ref[0, c, :, :].astype(jnp.float32)                   # (H, W)
        # Column-shifted planes built once per channel (XLU rolls + VPU selects).
        p_l = jnp.where(left_ok, pltpu.roll(p, 1, 1), 0.0)          # x[i, j-1]
        p_r = jnp.where(right_ok, pltpu.roll(p, W - 1, 1), 0.0)     # x[i, j+1]
        base = w_base + c * 9
        # Three independent accumulator chains, one per kernel row kh (v5e: keep 3).
        a_top = a_top + p_l * w_ref[base + 0] + p * w_ref[base + 1] + p_r * w_ref[base + 2]
        a_mid = a_mid + p_l * w_ref[base + 3] + p * w_ref[base + 4] + p_r * w_ref[base + 5]
        a_bot = a_bot + p_l * w_ref[base + 6] + p * w_ref[base + 7] + p_r * w_ref[base + 8]
        return a_top, a_mid, a_bot

    carry = (a_top_ref[...], a_mid_ref[...], a_bot_ref[...])
    if TC <= 8:
        for c in range(TC):                     # fully unrolled for small blocks
            carry = accumulate(c, carry)
    else:
        carry = jax.lax.fori_loop(0, TC, accumulate, carry, unroll=4)
    a_top, a_mid, a_bot = carry
    a_top_ref[...], a_mid_ref[...], a_bot_ref[...] = a_top, a_mid, a_bot

    @pl.when(cblk == pl.num_programs(1) - 1)
    def _finalize():
        # Apply the row (sublane) shifts once, after the channel reduction:
        #   conv[i, j] = a_top[i-1, j] + a_mid[i, j] + a_bot[i+1, j]
        row = jax.lax.broadcasted_iota(jnp.int32, (H, W), 0)
        from_above = jnp.where(row >= 1, pltpu.roll(a_top, 1, 0), 0.0)
        from_below = jnp.where(row <= H - 2, pltpu.roll(a_bot, H - 1, 0), 0.0)
        y = jax.nn.sigmoid(from_above + a_mid + from_below + b_ref[0])   # (H, W) f32

        if not upsample:
            o_ref[0, :, :] = y.astype(o_ref.dtype)
        else:
            f32_mxu = np.dtype(mxu_dtype) == np.dtype(np.float32)
            prec = (jax.lax.Precision.HIGHEST if f32_mxu
                    else jax.lax.Precision.DEFAULT)
            yc = y.astype(mxu_dtype)
            # Matmul order by aspect ratio: width-first is cheaper iff W >= H.
            if W >= H:
                t = jnp.dot(yc, uwt_ref[...],
                            preferred_element_type=jnp.float32, precision=prec)
                up = jnp.dot(uh_ref[...], t.astype(mxu_dtype),
                             preferred_element_type=jnp.float32, precision=prec)
            else:
                t = jnp.dot(uh_ref[...], yc,
                            preferred_element_type=jnp.float32, precision=prec)
                up = jnp.dot(t.astype(mxu_dtype), uwt_ref[...],
                             preferred_element_type=jnp.float32, precision=prec)

            Wo = uwt_ref.shape[1]
            rows_out = o_ref.shape[1]
            if pack == 1:
                o_ref[0, :, :] = up.astype(o_ref.dtype)
            else:
                # uh rows were pre-permuted so rows [k*rows_out, (k+1)*rows_out)
                # hold output rows k, k+pack, ...; placing them side-by-side in
                # the lane dim gives a lane-dense slab == row-major (Ho, Wo).
                for k in range(pack):
                    o_ref[0, :, k * Wo:(k + 1) * Wo] = (
                        up[k * rows_out:(k + 1) * rows_out, :].astype(o_ref.dtype))


# ----------------------------- wrapper / glue --------------------------------

def _interp_matrix_np(in_size, scale):
    """(in_size*scale, in_size) 1-D interpolation matrix matching
    F.interpolate(mode='bilinear', align_corners=False) along one axis.
    Host-side numpy (shape-only constant; no device scatter ops)."""
    out_size = in_size * scale
    o = np.arange(out_size, dtype=np.float64)
    src = np.maximum((o + 0.5) / scale - 0.5, 0.0)
    i0 = np.clip(np.floor(src).astype(np.int64), 0, in_size - 1)
    i1 = np.minimum(i0 + 1, in_size - 1)
    lam = src - i0
    u = np.zeros((out_size, in_size), np.float32)
    rows = np.arange(out_size)
    u[rows, i0] += (1.0 - lam).astype(np.float32)
    u[rows, i1] += lam.astype(np.float32)
    return u


def _pick_channel_block(C, max_block):
    """Largest divisor of C that is <= max_block (keeps blocks exact, no padding)."""
    for d in range(min(C, max_block), 0, -1):
        if C % d == 0:
            return d
    return 1


def disp_head_forward(x, weight, bias, scale, *, mxu_dtype=jnp.bfloat16,
                      max_channel_block=16):
    """x: (N, C, H, W) f32 or bf16; weight: (1, C, 3, 3); bias: (1,).
    Returns (N, 1, H*scale, W*scale) f32 == DispHead(x, scale)."""
    N, C, H, W = x.shape
    scale = int(scale)
    Ho, Wo = H * scale, W * scale
    upsample = scale > 1

    # Lane-packing factor: make the kernel's output last dim a multiple of 128
    # whenever shapes allow (wrapper reshape back is a free contiguous reshape).
    pack = 1
    if upsample and Wo < 128 and 128 % Wo == 0 and Ho % (128 // Wo) == 0:
        pack = 128 // Wo
    rows_out, cols_out = Ho // pack, Wo * pack

    tc = _pick_channel_block(C, max_channel_block)
    n_cblk = C // tc

    w_flat = weight.reshape(C * 9).astype(jnp.float32)
    b = bias.reshape(1).astype(jnp.float32)

    in_specs = [
        pl.BlockSpec(memory_space=pltpu.MemorySpace.SMEM),    # conv weights (f32)
        pl.BlockSpec(memory_space=pltpu.MemorySpace.SMEM),    # conv bias (f32)
    ]
    args = [w_flat, b]

    if upsample:
        u_h = _interp_matrix_np(H, scale)                     # (Ho, H)
        if pack > 1:
            perm = np.arange(Ho).reshape(rows_out, pack).T.reshape(-1)
            u_h = u_h[perm]
        u_wt = _interp_matrix_np(W, scale).T                  # (W, Wo)
        # Grid-invariant constants, resident in VMEM across the whole grid.
        in_specs += [pl.BlockSpec((Ho, H), lambda n, c: (0, 0)),
                     pl.BlockSpec((W, Wo), lambda n, c: (0, 0))]
        args += [jnp.asarray(u_h, dtype=mxu_dtype),
                 jnp.asarray(u_wt, dtype=mxu_dtype)]

    # Channel-streamed input block: (1, TC, H, W), DMA'd in the caller's dtype.
    in_specs.append(pl.BlockSpec((1, tc, H, W), lambda n, c: (n, c, 0, 0)))
    args.append(x)

    kernel = functools.partial(_disphead_kernel, pack=pack, scale=scale,
                               mxu_dtype=mxu_dtype)

    out = pl.pallas_call(
        kernel,
        out_shape=jax.ShapeDtypeStruct((N, rows_out, cols_out), jnp.float32),
        grid_spec=pltpu.PrefetchScalarGridSpec(
            num_scalar_prefetch=0,
            grid=(N, n_cblk),                      # reduction (channel) axis last
            in_specs=in_specs,
            out_specs=pl.BlockSpec((1, rows_out, cols_out), lambda n, c: (n, 0, 0)),
            scratch_shapes=[pltpu.VMEM((H, W), jnp.float32)] * 3),
        compiler_params=pltpu.CompilerParams(
            dimension_semantics=("parallel", "arbitrary"),
            vmem_limit_bytes=48 * 1024 * 1024),
    )(*args)

    return out.reshape(N, 1, Ho, Wo)              # free contiguous reshape to NCHW


# ------------------------ reference (validation only) ------------------------

def _bilinear_upsample_ref(x, scale):
    """Gather-based reference for F.interpolate(mode='bilinear', align_corners=False)."""
    def idx(in_size):
        o = jnp.arange(in_size * scale, dtype=jnp.float32)
        src = jnp.maximum((o + 0.5) / scale - 0.5, 0.0)
        i0 = jnp.clip(jnp.floor(src).astype(jnp.int32), 0, in_size - 1)
        i1 = jnp.minimum(i0 + 1, in_size - 1)
        lam = src - i0.astype(jnp.float32)
        return i0, i1, lam

    H, W = x.shape[2], x.shape[3]
    h0, h1, lh = idx(H)
    w0, w1, lw = idx(W)
    top = (x[:, :, h0, :] * (1.0 - lh)[None, None, :, None]
           + x[:, :, h1, :] * lh[None, None, :, None])
    return (top[:, :, :, w0] * (1.0 - lw)[None, None, None, :]
            + top[:, :, :, w1] * lw[None, None, None, :])


def _reference(x, weight, bias, scale):
    y = jax.lax.conv_general_dilated(
        x, weight, window_strides=(1, 1), padding=((1, 1), (1, 1)),
        dimension_numbers=("NCHW", "OIHW", "NCHW"),
        precision=jax.lax.Precision.HIGHEST)
    y = jax.nn.sigmoid(y + bias.reshape(1, 1, 1, 1))
    if scale > 1:
        y = _bilinear_upsample_ref(y, scale)
    return y


# --------------------------------- main --------------------------------------

if __name__ == "__main__":
    key = jax.random.PRNGKey(0)
    kx, kw, kb = jax.random.split(key, 3)

    N, C, H, W = 2, 4, 16, 16          # small input_dim=4 DispHead
    x = jax.random.normal(kx, (N, C, H, W), dtype=jnp.float32)
    weight = 0.1 * jax.random.normal(kw, (1, C, 3, 3), dtype=jnp.float32)
    bias = 0.05 * jax.random.normal(kb, (1,), dtype=jnp.float32)

    # Hard-coded PyTorch golden for 1-D half-pixel 2x interpolation of [0,1,2,3].
    golden = np.array([0.0, 0.25, 0.75, 1.25, 1.75, 2.25, 2.75, 3.0], np.float32)
    got = _interp_matrix_np(4, 2) @ np.arange(4, dtype=np.float32)
    assert np.allclose(got, golden, atol=1e-6), "upsample weights != PyTorch golden"

    ref2 = _reference(x, weight, bias, 2)
    ref1 = _reference(x, weight, bias, 1)

    fwd = jax.jit(disp_head_forward, static_argnames=("scale", "mxu_dtype"))

    # (a) Strict check: f32 input DMA + f32/HIGHEST MXU epilogue.
    out = jax.block_until_ready(fwd(x, weight, bias, scale=2, mxu_dtype=jnp.float32))
    assert out.shape == (N, 1, 2 * H, 2 * W), out.shape
    assert jnp.allclose(out, ref2, atol=1e-5, rtol=1e-5), "f32 path mismatch vs reference"

    # (b) Production path: bf16 input DMA + bf16 MXU epilogue (f32 accumulation).
    #     Tolerance covers bf16 quantization of the input and of sigmoid(conv)
    #     (values in [0,1], ~2^-9 relative); interp weights are exact in bf16.
    out_bf16 = jax.block_until_ready(fwd(x.astype(jnp.bfloat16), weight, bias, scale=2))
    assert out_bf16.shape == (N, 1, 2 * H, 2 * W), out_bf16.shape
    assert jnp.allclose(out_bf16, ref2, atol=2e-2, rtol=2e-2), "bf16 path mismatch vs reference"

    # (c) scale == 1 branch: no upsample, no MXU epilogue, no U inputs.
    out_s1 = jax.block_until_ready(fwd(x, weight, bias, scale=1, mxu_dtype=jnp.float32))
    assert out_s1.shape == (N, 1, H, W), out_s1.shape
    assert jnp.allclose(out_s1, ref1, atol=1e-5, rtol=1e-5), "scale=1 path mismatch vs reference"

    print("KERNEL_OK")
</pallas_src>

<mosaic_0001>
module attributes {stable_mosaic.version = 11 : i64} {
  func.func @_disphead_kernel(%arg0: i32, %arg1: i32, %arg2: memref<36xf32, #tpu.memory_space<smem>>, %arg3: memref<1xf32, #tpu.memory_space<smem>>, %arg4: memref<32x16xf32, #tpu.memory_space<vmem>>, %arg5: memref<16x32xf32, #tpu.memory_space<vmem>>, %arg6: memref<1x4x16x16xf32, #tpu.memory_space<vmem>>, %arg7: memref<1x8x128xf32, #tpu.memory_space<vmem>>, %arg8: memref<16x16xf32, #tpu.memory_space<vmem>>, %arg9: memref<16x16xf32, #tpu.memory_space<vmem>>, %arg10: memref<16x16xf32, #tpu.memory_space<vmem>>) attributes {dimension_semantics = [#tpu.dimension_semantics<parallel>, #tpu.dimension_semantics<arbitrary>], iteration_bounds = array<i64: 2, 1>, scalar_prefetch = 0 : i64, scratch_operands = 3 : i64, tpu.core_type = #tpu.core_type<tc>, window_params = [{transform_indices = @transform_0, window_bounds = array<i64: 36>}, {transform_indices = @transform_1, window_bounds = array<i64: 1>}, {pipeline_mode = #tpu.pipeline_mode<synchronous>, transform_indices = @transform_2, window_bounds = array<i64: 32, 16>}, {pipeline_mode = #tpu.pipeline_mode<synchronous>, transform_indices = @transform_3, window_bounds = array<i64: 16, 32>}, {transform_indices = @transform_4, window_bounds = array<i64: 1, 4, 16, 16>}, {transform_indices = @transform_5, window_bounds = array<i64: 1, 8, 128>}]} {
    %c0_i32 = arith.constant 0 : i32
    %0 = arith.cmpi eq, %arg1, %c0_i32 : i32
    %1 = arith.extui %0 : i1 to i32
    %c0_i32_0 = arith.constant 0 : i32
    %2 = arith.cmpi ne, %1, %c0_i32_0 : i32
    scf.if %2 {
      %cst_71 = arith.constant 0.000000e+00 : f32
      %270 = vector.broadcast %cst_71 : f32 to vector<16x16xf32>
      %c0_72 = arith.constant 0 : index
      %c0_73 = arith.constant 0 : index
      %271 = vector.load %arg8[%c0_72, %c0_73] : memref<16x16xf32, #tpu.memory_space<vmem>>, vector<16x16xf32>
      tpu.vector_store %arg8[%c0_72, %c0_73], %270 {strides = array<i32>} : memref<16x16xf32, #tpu.memory_space<vmem>>, vector<16x16xf32>,
      %cst_74 = arith.constant 0.000000e+00 : f32
      %272 = vector.broadcast %cst_74 : f32 to vector<16x16xf32>
      %c0_75 = arith.constant 0 : index
      %c0_76 = arith.constant 0 : index
      %273 = vector.load %arg9[%c0_75, %c0_76] : memref<16x16xf32, #tpu.memory_space<vmem>>, vector<16x16xf32>
      tpu.vector_store %arg9[%c0_75, %c0_76], %272 {strides = array<i32>} : memref<16x16xf32, #tpu.memory_space<vmem>>, vector<16x16xf32>,
      %cst_77 = arith.constant 0.000000e+00 : f32
      %274 = vector.broadcast %cst_77 : f32 to vector<16x16xf32>
      %c0_78 = arith.constant 0 : index
      %c0_79 = arith.constant 0 : index
      %275 = vector.load %arg10[%c0_78, %c0_79] : memref<16x16xf32, #tpu.memory_space<vmem>>, vector<16x16xf32>
      tpu.vector_store %arg10[%c0_78, %c0_79], %274 {strides = array<i32>} : memref<16x16xf32, #tpu.memory_space<vmem>>, vector<16x16xf32>,
    } else {
    }
    %3 = tpu.iota {dimensions = array<i32: 1>} : vector<16x16xi32>
    %c1_i32 = arith.constant 1 : i32
    %4 = vector.broadcast %c1_i32 : i32 to vector<16x16xi32>
    %5 = arith.cmpi sge, %3, %4 : vector<16x16xi32>
    %c14_i32 = arith.constant 14 : i32
    %6 = vector.broadcast %c14_i32 : i32 to vector<16x16xi32>
    %7 = arith.cmpi sle, %3, %6 : vector<16x16xi32>
    %c36_i32 = arith.constant 36 : i32
    %8 = arith.muli %arg1, %c36_i32 : i32
    %c0 = arith.constant 0 : index
    %c0_1 = arith.constant 0 : index
    %9 = vector.load %arg8[%c0, %c0_1] : memref<16x16xf32, #tpu.memory_space<vmem>>, vector<16x16xf32>
    %c0_2 = arith.constant 0 : index
    %c0_3 = arith.constant 0 : index
    %10 = vector.load %arg9[%c0_2, %c0_3] : memref<16x16xf32, #tpu.memory_space<vmem>>, vector<16x16xf32>
    %c0_4 = arith.constant 0 : index
    %c0_5 = arith.constant 0 : index
    %11 = vector.load %arg10[%c0_4, %c0_5] : memref<16x16xf32, #tpu.memory_space<vmem>>, vector<16x16xf32>
    %c0_6 = arith.constant 0 : index
    %c0_7 = arith.constant 0 : index
    %c0_8 = arith.constant 0 : index
    %c0_9 = arith.constant 0 : index
    %12 = vector.load %arg6[%c0_6, %c0_7, %c0_8, %c0_9] : memref<1x4x16x16xf32, #tpu.memory_space<vmem>>, vector<1x1x16x16xf32>
    %13 = vector.shape_cast %12 : vector<1x1x16x16xf32> to vector<16x16xf32>
    %c1_i32_10 = arith.constant 1 : i32
    %14 = tpu.dynamic_rotate %13 by %c1_i32_10 dim 1 : vector<16x16xf32>, i32 -> vector<16x16xf32>
    %cst = arith.constant 0.000000e+00 : f32
    %15 = vector.broadcast %cst : f32 to vector<16x16xf32>
    %16 = arith.select %5, %14, %15 : vector<16x16xi1>, vector<16x16xf32>
    %c15_i32 = arith.constant 15 : i32
    %17 = tpu.dynamic_rotate %13 by %c15_i32 dim 1 : vector<16x16xf32>, i32 -> vector<16x16xf32>
    %cst_11 = arith.constant 0.000000e+00 : f32
    %18 = vector.broadcast %cst_11 : f32 to vector<16x16xf32>
    %19 = arith.select %7, %17, %18 : vector<16x16xi1>, vector<16x16xf32>
    %c0_i32_12 = arith.constant 0 : i32
    %20 = arith.addi %8, %c0_i32_12 : i32
    %c0_i32_13 = arith.constant 0 : i32
    %21 = arith.addi %20, %c0_i32_13 : i32
    %22 = arith.index_cast %21 : i32 to index
    %23 = memref.load %arg2[%22] : memref<36xf32, #tpu.memory_space<smem>>
    %24 = vector.broadcast %23 : f32 to vector<16x16xf32>
    %25 = arith.mulf %16, %24 : vector<16x16xf32>
    %26 = arith.addf %9, %25 : vector<16x16xf32>
    %c1_i32_14 = arith.constant 1 : i32
    %27 = arith.addi %20, %c1_i32_14 : i32
    %28 = arith.index_cast %27 : i32 to index
    %29 = memref.load %arg2[%28] : memref<36xf32, #tpu.memory_space<smem>>
    %30 = vector.broadcast %29 : f32 to vector<16x16xf32>
    %31 = arith.mulf %13, %30 : vector<16x16xf32>
    %32 = arith.addf %26, %31 : vector<16x16xf32>
    %c2_i32 = arith.constant 2 : i32
    %33 = arith.addi %20, %c2_i32 : i32
    %34 = arith.index_cast %33 : i32 to index
    %35 = memref.load %arg2[%34] : memref<36xf32, #tpu.memory_space<smem>>
    %36 = vector.broadcast %35 : f32 to vector<16x16xf32>
    %37 = arith.mulf %19, %36 : vector<16x16xf32>
    %38 = arith.addf %32, %37 : vector<16x16xf32>
    %c3_i32 = arith.constant 3 : i32
    %39 = arith.addi %20, %c3_i32 : i32
    %40 = arith.index_cast %39 : i32 to index
    %41 = memref.load %arg2[%40] : memref<36xf32, #tpu.memory_space<smem>>
    %42 = vector.broadcast %41 : f32 to vector<16x16xf32>
    %43 = arith.mulf %16, %42 : vector<16x16xf32>
    %44 = arith.addf %10, %43 : vector<16x16xf32>
    %c4_i32 = arith.constant 4 : i32
    %45 = arith.addi %20, %c4_i32 : i32
    %46 = arith.index_cast %45 : i32 to index
    %47 = memref.load %arg2[%46] : memref<36xf32, #tpu.memory_space<smem>>
    %48 = vector.broadcast %47 : f32 to vector<16x16xf32>
    %49 = arith.mulf %13, %48 : vector<16x16xf32>
    %50 = arith.addf %44, %49 : vector<16x16xf32>
    %c5_i32 = arith.constant 5 : i32
    %51 = arith.addi %20, %c5_i32 : i32
    %52 = arith.index_cast %51 : i32 to index
    %53 = memref.load %arg2[%52] : memref<36xf32, #tpu.memory_space<smem>>
    %54 = vector.broadcast %53 : f32 to vector<16x16xf32>
    %55 = arith.mulf %19, %54 : vector<16x16xf32>
    %56 = arith.addf %50, %55 : vector<16x16xf32>
    %c6_i32 = arith.constant 6 : i32
    %57 = arith.addi %20, %c6_i32 : i32
    %58 = arith.index_cast %57 : i32 to index
    %59 = memref.load %arg2[%58] : memref<36xf32, #tpu.memory_space<smem>>
    %60 = vector.broadcast %59 : f32 to vector<16x16xf32>
    %61 = arith.mulf %16, %60 : vector<16x16xf32>
    %62 = arith.addf %11, %61 : vector<16x16xf32>
    %c7_i32 = arith.constant 7 : i32
    %63 = arith.addi %20, %c7_i32 : i32
    %64 = arith.index_cast %63 : i32 to index
    %65 = memref.load %arg2[%64] : memref<36xf32, #tpu.memory_space<smem>>
    %66 = vector.broadcast %65 : f32 to vector<16x16xf32>
    %67 = arith.mulf %13, %66 : vector<16x16xf32>
    %68 = arith.addf %62, %67 : vector<16x16xf32>
    %c8_i32 = arith.constant 8 : i32
    %69 = arith.addi %20, %c8_i32 : i32
    %70 = arith.index_cast %69 : i32 to index
    %71 = memref.load %arg2[%70] : memref<36xf32, #tpu.memory_space<smem>>
    %72 = vector.broadcast %71 : f32 to vector<16x16xf32>
    %73 = arith.mulf %19, %72 : vector<16x16xf32>
    %74 = arith.addf %68, %73 : vector<16x16xf32>
    %c0_15 = arith.constant 0 : index
    %c1 = arith.constant 1 : index
    %c0_16 = arith.constant 0 : index
    %c0_17 = arith.constant 0 : index
    %75 = vector.load %arg6[%c0_15, %c1, %c0_16, %c0_17] : memref<1x4x16x16xf32, #tpu.memory_space<vmem>>, vector<1x1x16x16xf32>
    %76 = vector.shape_cast %75 : vector<1x1x16x16xf32> to vector<16x16xf32>
    %c1_i32_18 = arith.constant 1 : i32
    %77 = tpu.dynamic_rotate %76 by %c1_i32_18 dim 1 : vector<16x16xf32>, i32 -> vector<16x16xf32>
    %cst_19 = arith.constant 0.000000e+00 : f32
    %78 = vector.broadcast %cst_19 : f32 to vector<16x16xf32>
    %79 = arith.select %5, %77, %78 : vector<16x16xi1>, vector<16x16xf32>
    %c15_i32_20 = arith.constant 15 : i32
    %80 = tpu.dynamic_rotate %76 by %c15_i32_20 dim 1 : vector<16x16xf32>, i32 -> vector<16x16xf32>
    %cst_21 = arith.constant 0.000000e+00 : f32
    %81 = vector.broadcast %cst_21 : f32 to vector<16x16xf32>
    %82 = arith.select %7, %80, %81 : vector<16x16xi1>, vector<16x16xf32>
    %c9_i32 = arith.constant 9 : i32
    %83 = arith.addi %8, %c9_i32 : i32
    %c0_i32_22 = arith.constant 0 : i32
    %84 = arith.addi %83, %c0_i32_22 : i32
    %85 = arith.index_cast %84 : i32 to index
    %86 = memref.load %arg2[%85] : memref<36xf32, #tpu.memory_space<smem>>
    %87 = vector.broadcast %86 : f32 to vector<16x16xf32>
    %88 = arith.mulf %79, %87 : vector<16x16xf32>
    %89 = arith.addf %38, %88 : vector<16x16xf32>
    %c1_i32_23 = arith.constant 1 : i32
    %90 = arith.addi %83, %c1_i32_23 : i32
    %91 = arith.index_cast %90 : i32 to index
    %92 = memref.load %arg2[%91] : memref<36xf32, #tpu.memory_space<smem>>
    %93 = vector.broadcast %92 : f32 to vector<16x16xf32>
    %94 = arith.mulf %76, %93 : vector<16x16xf32>
    %95 = arith.addf %89, %94 : vector<16x16xf32>
    %c2_i32_24 = arith.constant 2 : i32
    %96 = arith.addi %83, %c2_i32_24 : i32
    %97 = arith.index_cast %96 : i32 to index
    %98 = memref.load %arg2[%97] : memref<36xf32, #tpu.memory_space<smem>>
    %99 = vector.broadcast %98 : f32 to vector<16x16xf32>
    %100 = arith.mulf %82, %99 : vector<16x16xf32>
    %101 = arith.addf %95, %100 : vector<16x16xf32>
    %c3_i32_25 = arith.constant 3 : i32
    %102 = arith.addi %83, %c3_i32_25 : i32
    %103 = arith.index_cast %102 : i32 to index
    %104 = memref.load %arg2[%103] : memref<36xf32, #tpu.memory_space<smem>>
    %105 = vector.broadcast %104 : f32 to vector<16x16xf32>
    %106 = arith.mulf %79, %105 : vector<16x16xf32>
    %107 = arith.addf %56, %106 : vector<16x16xf32>
    %c4_i32_26 = arith.constant 4 : i32
    %108 = arith.addi %83, %c4_i32_26 : i32
    %109 = arith.index_cast %108 : i32 to index
    %110 = memref.load %arg2[%109] : memref<36xf32, #tpu.memory_space<smem>>
    %111 = vector.broadcast %110 : f32 to vector<16x16xf32>
    %112 = arith.mulf %76, %111 : vector<16x16xf32>
    %113 = arith.addf %107, %112 : vector<16x16xf32>
    %c5_i32_27 = arith.constant 5 : i32
    %114 = arith.addi %83, %c5_i32_27 : i32
    %115 = arith.index_cast %114 : i32 to index
    %116 = memref.load %arg2[%115] : memref<36xf32, #tpu.memory_space<smem>>
    %117 = vector.broadcast %116 : f32 to vector<16x16xf32>
    %118 = arith.mulf %82, %117 : vector<16x16xf32>
    %119 = arith.addf %113, %118 : vector<16x16xf32>
    %c6_i32_28 = arith.constant 6 : i32
    %120 = arith.addi %83, %c6_i32_28 : i32
    %121 = arith.index_cast %120 : i32 to index
    %122 = memref.load %arg2[%121] : memref<36xf32, #tpu.memory_space<smem>>
    %123 = vector.broadcast %122 : f32 to vector<16x16xf32>
    %124 = arith.mulf %79, %123 : vector<16x16xf32>
    %125 = arith.addf %74, %124 : vector<16x16xf32>
    %c7_i32_29 = arith.constant 7 : i32
    %126 = arith.addi %83, %c7_i32_29 : i32
    %127 = arith.index_cast %126 : i32 to index
    %128 = memref.load %arg2[%127] : memref<36xf32, #tpu.memory_space<smem>>
    %129 = vector.broadcast %128 : f32 to vector<16x16xf32>
    %130 = arith.mulf %76, %129 : vector<16x16xf32>
    %131 = arith.addf %125, %130 : vector<16x16xf32>
    %c8_i32_30 = arith.constant 8 : i32
    %132 = arith.addi %83, %c8_i32_30 : i32
    %133 = arith.index_cast %132 : i32 to index
    %134 = memref.load %arg2[%133] : memref<36xf32, #tpu.memory_space<smem>>
    %135 = vector.broadcast %134 : f32 to vector<16x16xf32>
    %136 = arith.mulf %82, %135 : vector<16x16xf32>
    %137 = arith.addf %131, %136 : vector<16x16xf32>
    %c0_31 = arith.constant 0 : index
    %c2 = arith.constant 2 : index
    %c0_32 = arith.constant 0 : index
    %c0_33 = arith.constant 0 : index
    %138 = vector.load %arg6[%c0_31, %c2, %c0_32, %c0_33] : memref<1x4x16x16xf32, #tpu.memory_space<vmem>>, vector<1x1x16x16xf32>
    %139 = vector.shape_cast %138 : vector<1x1x16x16xf32> to vector<16x16xf32>
    %c1_i32_34 = arith.constant 1 : i32
    %140 = tpu.dynamic_rotate %139 by %c1_i32_34 dim 1 : vector<16x16xf32>, i32 -> vector<16x16xf32>
    %cst_35 = arith.constant 0.000000e+00 : f32
    %141 = vector.broadcast %cst_35 : f32 to vector<16x16xf32>
    %142 = arith.select %5, %140, %141 : vector<16x16xi1>, vector<16x16xf32>
    %c15_i32_36 = arith.constant 15 : i32
    %143 = tpu.dynamic_rotate %139 by %c15_i32_36 dim 1 : vector<16x16xf32>, i32 -> vector<16x16xf32>
    %cst_37 = arith.constant 0.000000e+00 : f32
    %144 = vector.broadcast %cst_37 : f32 to vector<16x16xf32>
    %145 = arith.select %7, %143, %144 : vector<16x16xi1>, vector<16x16xf32>
    %c18_i32 = arith.constant 18 : i32
    %146 = arith.addi %8, %c18_i32 : i32
    %c0_i32_38 = arith.constant 0 : i32
    %147 = arith.addi %146, %c0_i32_38 : i32
    %148 = arith.index_cast %147 : i32 to index
    %149 = memref.load %arg2[%148] : memref<36xf32, #tpu.memory_space<smem>>
    %150 = vector.broadcast %149 : f32 to vector<16x16xf32>
    %151 = arith.mulf %142, %150 : vector<16x16xf32>
    %152 = arith.addf %101, %151 : vector<16x16xf32>
    %c1_i32_39 = arith.constant 1 : i32
    %153 = arith.addi %146, %c1_i32_39 : i32
    %154 = arith.index_cast %153 : i32 to index
    %155 = memref.load %arg2[%154] : memref<36xf32, #tpu.memory_space<smem>>
    %156 = vector.broadcast %155 : f32 to vector<16x16xf32>
    %157 = arith.mulf %139, %156 : vector<16x16xf32>
    %158 = arith.addf %152, %157 : vector<16x16xf32>
    %c2_i32_40 = arith.constant 2 : i32
    %159 = arith.addi %146, %c2_i32_40 : i32
    %160 = arith.index_cast %159 : i32 to index
    %161 = memref.load %arg2[%160] : memref<36xf32, #tpu.memory_space<smem>>
    %162 = vector.broadcast %161 : f32 to vector<16x16xf32>
    %163 = arith.mulf %145, %162 : vector<16x16xf32>
    %164 = arith.addf %158, %163 : vector<16x16xf32>
    %c3_i32_41 = arith.constant 3 : i32
    %165 = arith.addi %146, %c3_i32_41 : i32
    %166 = arith.index_cast %165 : i32 to index
    %167 = memref.load %arg2[%166] : memref<36xf32, #tpu.memory_space<smem>>
    %168 = vector.broadcast %167 : f32 to vector<16x16xf32>
    %169 = arith.mulf %142, %168 : vector<16x16xf32>
    %170 = arith.addf %119, %169 : vector<16x16xf32>
    %c4_i32_42 = arith.constant 4 : i32
    %171 = arith.addi %146, %c4_i32_42 : i32
    %172 = arith.index_cast %171 : i32 to index
    %173 = memref.load %arg2[%172] : memref<36xf32, #tpu.memory_space<smem>>
    %174 = vector.broadcast %173 : f32 to vector<16x16xf32>
    %175 = arith.mulf %139, %174 : vector<16x16xf32>
    %176 = arith.addf %170, %175 : vector<16x16xf32>
    %c5_i32_43 = arith.constant 5 : i32
    %177 = arith.addi %146, %c5_i32_43 : i32
    %178 = arith.index_cast %177 : i32 to index
    %179 = memref.load %arg2[%178] : memref<36xf32, #tpu.memory_space<smem>>
    %180 = vector.broadcast %179 : f32 to vector<16x16xf32>
    %181 = arith.mulf %145, %180 : vector<16x16xf32>
    %182 = arith.addf %176, %181 : vector<16x16xf32>
    %c6_i32_44 = arith.constant 6 : i32
    %183 = arith.addi %146, %c6_i32_44 : i32
    %184 = arith.index_cast %183 : i32 to index
    %185 = memref.load %arg2[%184] : memref<36xf32, #tpu.memory_space<smem>>
    %186 = vector.broadcast %185 : f32 to vector<16x16xf32>
    %187 = arith.mulf %142, %186 : vector<16x16xf32>
    %188 = arith.addf %137, %187 : vector<16x16xf32>
    %c7_i32_45 = arith.constant 7 : i32
    %189 = arith.addi %146, %c7_i32_45 : i32
    %190 = arith.index_cast %189 : i32 to index
    %191 = memref.load %arg2[%190] : memref<36xf32, #tpu.memory_space<smem>>
    %192 = vector.broadcast %191 : f32 to vector<16x16xf32>
    %193 = arith.mulf %139, %192 : vector<16x16xf32>
    %194 = arith.addf %188, %193 : vector<16x16xf32>
    %c8_i32_46 = arith.constant 8 : i32
    %195 = arith.addi %146, %c8_i32_46 : i32
    %196 = arith.index_cast %195 : i32 to index
    %197 = memref.load %arg2[%196] : memref<36xf32, #tpu.memory_space<smem>>
    %198 = vector.broadcast %197 : f32 to vector<16x16xf32>
    %199 = arith.mulf %145, %198 : vector<16x16xf32>
    %200 = arith.addf %194, %199 : vector<16x16xf32>
    %c0_47 = arith.constant 0 : index
    %c3 = arith.constant 3 : index
    %c0_48 = arith.constant 0 : index
    %c0_49 = arith.constant 0 : index
    %201 = vector.load %arg6[%c0_47, %c3, %c0_48, %c0_49] : memref<1x4x16x16xf32, #tpu.memory_space<vmem>>, vector<1x1x16x16xf32>
    %202 = vector.shape_cast %201 : vector<1x1x16x16xf32> to vector<16x16xf32>
    %c1_i32_50 = arith.constant 1 : i32
    %203 = tpu.dynamic_rotate %202 by %c1_i32_50 dim 1 : vector<16x16xf32>, i32 -> vector<16x16xf32>
    %cst_51 = arith.constant 0.000000e+00 : f32
    %204 = vector.broadcast %cst_51 : f32 to vector<16x16xf32>
    %205 = arith.select %5, %203, %204 : vector<16x16xi1>, vector<16x16xf32>
    %c15_i32_52 = arith.constant 15 : i32
    %206 = tpu.dynamic_rotate %202 by %c15_i32_52 dim 1 : vector<16x16xf32>, i32 -> vector<16x16xf32>
    %cst_53 = arith.constant 0.000000e+00 : f32
    %207 = vector.broadcast %cst_53 : f32 to vector<16x16xf32>
    %208 = arith.select %7, %206, %207 : vector<16x16xi1>, vector<16x16xf32>
    %c27_i32 = arith.constant 27 : i32
    %209 = arith.addi %8, %c27_i32 : i32
    %c0_i32_54 = arith.constant 0 : i32
    %210 = arith.addi %209, %c0_i32_54 : i32
    %211 = arith.index_cast %210 : i32 to index
    %212 = memref.load %arg2[%211] : memref<36xf32, #tpu.memory_space<smem>>
    %213 = vector.broadcast %212 : f32 to vector<16x16xf32>
    %214 = arith.mulf %205, %213 : vector<16x16xf32>
    %215 = arith.addf %164, %214 : vector<16x16xf32>
    %c1_i32_55 = arith.constant 1 : i32
    %216 = arith.addi %209, %c1_i32_55 : i32
    %217 = arith.index_cast %216 : i32 to index
    %218 = memref.load %arg2[%217] : memref<36xf32, #tpu.memory_space<smem>>
    %219 = vector.broadcast %218 : f32 to vector<16x16xf32>
    %220 = arith.mulf %202, %219 : vector<16x16xf32>
    %221 = arith.addf %215, %220 : vector<16x16xf32>
    %c2_i32_56 = arith.constant 2 : i32
    %222 = arith.addi %209, %c2_i32_56 : i32
    %223 = arith.index_cast %222 : i32 to index
    %224 = memref.load %arg2[%223] : memref<36xf32, #tpu.memory_space<smem>>
    %225 = vector.broadcast %224 : f32 to vector<16x16xf32>
    %226 = arith.mulf %208, %225 : vector<16x16xf32>
    %227 = arith.addf %221, %226 : vector<16x16xf32>
    %c3_i32_57 = arith.constant 3 : i32
    %228 = arith.addi %209, %c3_i32_57 : i32
    %229 = arith.index_cast %228 : i32 to index
    %230 = memref.load %arg2[%229] : memref<36xf32, #tpu.memory_space<smem>>
    %231 = vector.broadcast %230 : f32 to vector<16x16xf32>
    %232 = arith.mulf %205, %231 : vector<16x16xf32>
    %233 = arith.addf %182, %232 : vector<16x16xf32>
    %c4_i32_58 = arith.constant 4 : i32
    %234 = arith.addi %209, %c4_i32_58 : i32
    %235 = arith.index_cast %234 : i32 to index
    %236 = memref.load %arg2[%235] : memref<36xf32, #tpu.memory_space<smem>>
    %237 = vector.broadcast %236 : f32 to vector<16x16xf32>
    %238 = arith.mulf %202, %237 : vector<16x16xf32>
    %239 = arith.addf %233, %238 : vector<16x16xf32>
    %c5_i32_59 = arith.constant 5 : i32
    %240 = arith.addi %209, %c5_i32_59 : i32
    %241 = arith.index_cast %240 : i32 to index
    %242 = memref.load %arg2[%241] : memref<36xf32, #tpu.memory_space<smem>>
    %243 = vector.broadcast %242 : f32 to vector<16x16xf32>
    %244 = arith.mulf %208, %243 : vector<16x16xf32>
    %245 = arith.addf %239, %244 : vector<16x16xf32>
    %c6_i32_60 = arith.constant 6 : i32
    %246 = arith.addi %209, %c6_i32_60 : i32
    %247 = arith.index_cast %246 : i32 to index
    %248 = memref.load %arg2[%247] : memref<36xf32, #tpu.memory_space<smem>>
    %249 = vector.broadcast %248 : f32 to vector<16x16xf32>
    %250 = arith.mulf %205, %249 : vector<16x16xf32>
    %251 = arith.addf %200, %250 : vector<16x16xf32>
    %c7_i32_61 = arith.constant 7 : i32
    %252 = arith.addi %209, %c7_i32_61 : i32
    %253 = arith.index_cast %252 : i32 to index
    %254 = memref.load %arg2[%253] : memref<36xf32, #tpu.memory_space<smem>>
    %255 = vector.broadcast %254 : f32 to vector<16x16xf32>
    %256 = arith.mulf %202, %255 : vector<16x16xf32>
    %257 = arith.addf %251, %256 : vector<16x16xf32>
    %c8_i32_62 = arith.constant 8 : i32
    %258 = arith.addi %209, %c8_i32_62 : i32
    %259 = arith.index_cast %258 : i32 to index
    %260 = memref.load %arg2[%259] : memref<36xf32, #tpu.memory_space<smem>>
    %261 = vector.broadcast %260 : f32 to vector<16x16xf32>
    %262 = arith.mulf %208, %261 : vector<16x16xf32>
    %263 = arith.addf %257, %262 : vector<16x16xf32>
    %c0_63 = arith.constant 0 : index
    %c0_64 = arith.constant 0 : index
    %264 = vector.load %arg8[%c0_63, %c0_64] : memref<16x16xf32, #tpu.memory_space<vmem>>, vector<16x16xf32>
    tpu.vector_store %arg8[%c0_63, %c0_64], %227 {strides = array<i32>} : memref<16x16xf32, #tpu.memory_space<vmem>>, vector<16x16xf32>,
    %c0_65 = arith.constant 0 : index
    %c0_66 = arith.constant 0 : index
    %265 = vector.load %arg9[%c0_65, %c0_66] : memref<16x16xf32, #tpu.memory_space<vmem>>, vector<16x16xf32>
    tpu.vector_store %arg9[%c0_65, %c0_66], %245 {strides = array<i32>} : memref<16x16xf32, #tpu.memory_space<vmem>>, vector<16x16xf32>,
    %c0_67 = arith.constant 0 : index
    %c0_68 = arith.constant 0 : index
    %266 = vector.load %arg10[%c0_67, %c0_68] : memref<16x16xf32, #tpu.memory_space<vmem>>, vector<16x16xf32>
    tpu.vector_store %arg10[%c0_67, %c0_68], %263 {strides = array<i32>} : memref<16x16xf32, #tpu.memory_space<vmem>>, vector<16x16xf32>,
    %c0_i32_69 = arith.constant 0 : i32
    %267 = arith.cmpi eq, %arg1, %c0_i32_69 : i32
    %268 = arith.extui %267 : i1 to i32
    %c0_i32_70 = arith.constant 0 : i32
    %269 = arith.cmpi ne, %268, %c0_i32_70 : i32
    scf.if %269 {
      %270 = tpu.iota {dimensions = array<i32: 0>} : vector<16x16xi32>
      %c1_i32_71 = arith.constant 1 : i32
      %271 = vector.broadcast %c1_i32_71 : i32 to vector<16x16xi32>
      %272 = arith.cmpi sge, %270, %271 : vector<16x16xi32>
      %c1_i32_72 = arith.constant 1 : i32
      %273 = tpu.dynamic_rotate %227 by %c1_i32_72 dim 0 : vector<16x16xf32>, i32 -> vector<16x16xf32>
      %cst_73 = arith.constant 0.000000e+00 : f32
      %274 = vector.broadcast %cst_73 : f32 to vector<16x16xf32>
      %275 = arith.select %272, %273, %274 : vector<16x16xi1>, vector<16x16xf32>
      %c14_i32_74 = arith.constant 14 : i32
      %276 = vector.broadcast %c14_i32_74 : i32 to vector<16x16xi32>
      %277 = arith.cmpi sle, %270, %276 : vector<16x16xi32>
      %c15_i32_75 = arith.constant 15 : i32
      %278 = tpu.dynamic_rotate %263 by %c15_i32_75 dim 0 : vector<16x16xf32>, i32 -> vector<16x16xf32>
      %cst_76 = arith.constant 0.000000e+00 : f32
      %279 = vector.broadcast %cst_76 : f32 to vector<16x16xf32>
      %280 = arith.select %277, %278, %279 : vector<16x16xi1>, vector<16x16xf32>
      %281 = arith.addf %275, %245 : vector<16x16xf32>
      %282 = arith.addf %281, %280 : vector<16x16xf32>
      %c0_77 = arith.constant 0 : index
      %283 = memref.load %arg3[%c0_77] : memref<1xf32, #tpu.memory_space<smem>>
      %284 = vector.broadcast %283 : f32 to vector<16x16xf32>
      %285 = arith.addf %282, %284 : vector<16x16xf32>
      %286 = arith.negf %285 : vector<16x16xf32>
      %287 = math.exp %286 : vector<16x16xf32>
      %cst_78 = arith.constant 1.000000e+00 : f32
      %288 = vector.broadcast %cst_78 : f32 to vector<16x16xf32>
      %289 = arith.addf %288, %287 : vector<16x16xf32>
      %290 = arith.divf %288, %289 : vector<16x16xf32>
      %c0_79 = arith.constant 0 : index
      %c0_80 = arith.constant 0 : index
      %291 = vector.load %arg5[%c0_79, %c0_80] : memref<16x32xf32, #tpu.memory_space<vmem>>, vector<16x32xf32>
      %cst_81 = arith.constant dense<0.000000e+00> : vector<16x32xf32>
      %292 = tpu.matmul %290, %291, %cst_81 {dimension_numbers = #tpu.dot_dimension_numbers<[1], [0], [0], [1], [0, 0, 1, 1], [], []>, precision = #tpu.contract_precision<fp32>} : vector<16x16xf32>, vector<16x32xf32>, vector<16x32xf32> -> vector<16x32xf32>
      %c0_82 = arith.constant 0 : index
      %c0_83 = arith.constant 0 : index
      %293 = vector.load %arg4[%c0_82, %c0_83] : memref<32x16xf32, #tpu.memory_space<vmem>>, vector<32x16xf32>
      %cst_84 = arith.constant dense<0.000000e+00> : vector<32x32xf32>
      %294 = tpu.matmul %293, %292, %cst_84 {dimension_numbers = #tpu.dot_dimension_numbers<[1], [0], [0], [1], [0, 0, 1, 1], [], []>, precision = #tpu.contract_precision<fp32>} : vector<32x16xf32>, vector<16x32xf32>, vector<32x32xf32> -> vector<32x32xf32>
      %295 = vector.extract_strided_slice %294 {offsets = [0, 0], sizes = [8, 32], strides = [1, 1]} : vector<32x32xf32> to vector<8x32xf32>
      %c0_85 = arith.constant 0 : index
      %c0_86 = arith.constant 0 : index
      %c0_87 = arith.constant 0 : index
      %296 = vector.load %arg7[%c0_85, %c0_86, %c0_87] : memref<1x8x128xf32, #tpu.memory_space<vmem>>, vector<1x8x32xf32>
      %297 = vector.shape_cast %296 : vector<1x8x32xf32> to vector<8x32xf32>
      %298 = vector.shape_cast %295 : vector<8x32xf32> to vector<1x8x32xf32>
      tpu.vector_store %arg7[%c0_85, %c0_86, %c0_87], %298 {strides = array<i32>} : memref<1x8x128xf32, #tpu.memory_space<vmem>>, vector<1x8x32xf32>,
      %299 = vector.extract_strided_slice %294 {offsets = [8, 0], sizes = [8, 32], strides = [1, 1]} : vector<32x32xf32> to vector<8x32xf32>
      %c0_88 = arith.constant 0 : index
      %c0_89 = arith.constant 0 : index
      %c32 = arith.constant 32 : index
      %300 = vector.load %arg7[%c0_88, %c0_89, %c32] : memref<1x8x128xf32, #tpu.memory_space<vmem>>, vector<1x8x32xf32>
      %301 = vector.shape_cast %300 : vector<1x8x32xf32> to vector<8x32xf32>
      %302 = vector.shape_cast %299 : vector<8x32xf32> to vector<1x8x32xf32>
      tpu.vector_store %arg7[%c0_88, %c0_89, %c32], %302 {strides = array<i32>} : memref<1x8x128xf32, #tpu.memory_space<vmem>>, vector<1x8x32xf32>,
      %303 = vector.extract_strided_slice %294 {offsets = [16, 0], sizes = [8, 32], strides = [1, 1]} : vector<32x32xf32> to vector<8x32xf32>
      %c0_90 = arith.constant 0 : index
      %c0_91 = arith.constant 0 : index
      %c64 = arith.constant 64 : index
      %304 = vector.load %arg7[%c0_90, %c0_91, %c64] : memref<1x8x128xf32, #tpu.memory_space<vmem>>, vector<1x8x32xf32>
      %305 = vector.shape_cast %304 : vector<1x8x32xf32> to vector<8x32xf32>
      %306 = vector.shape_cast %303 : vector<8x32xf32> to vector<1x8x32xf32>
      tpu.vector_store %arg7[%c0_90, %c0_91, %c64], %306 {strides = array<i32>} : memref<1x8x128xf32, #tpu.memory_space<vmem>>, vector<1x8x32xf32>,
      %307 = vector.extract_strided_slice %294 {offsets = [24, 0], sizes = [8, 32], strides = [1, 1]} : vector<32x32xf32> to vector<8x32xf32>
      %c0_92 = arith.constant 0 : index
      %c0_93 = arith.constant 0 : index
      %c96 = arith.constant 96 : index
      %308 = vector.load %arg7[%c0_92, %c0_93, %c96] : memref<1x8x128xf32, #tpu.memory_space<vmem>>, vector<1x8x32xf32>
      %309 = vector.shape_cast %308 : vector<1x8x32xf32> to vector<8x32xf32>
      %310 = vector.shape_cast %307 : vector<8x32xf32> to vector<1x8x32xf32>
      tpu.vector_store %arg7[%c0_92, %c0_93, %c96], %310 {strides = array<i32>} : memref<1x8x128xf32, #tpu.memory_space<vmem>>, vector<1x8x32xf32>,
    } else {
    }
    return
  }
  func.func @transform_0(%arg0: i32, %arg1: i32) -> i32 {
    %c0_i32 = arith.constant 0 : i32
    %c0_i32_0 = arith.constant 0 : i32
    return %c0_i32 : i32
  }
  func.func @transform_1(%arg0: i32, %arg1: i32) -> i32 {
    %c0_i32 = arith.constant 0 : i32
    %c0_i32_0 = arith.constant 0 : i32
    return %c0_i32 : i32
  }
  func.func @transform_2(%arg0: i32, %arg1: i32) -> (i32, i32) {
    %c0_i32 = arith.constant 0 : i32
    %c0_i32_0 = arith.constant 0 : i32
    %c0_i32_1 = arith.constant 0 : i32
    return %c0_i32, %c0_i32_0 : i32, i32
  }
  func.func @transform_3(%arg0: i32, %arg1: i32) -> (i32, i32) {
    %c0_i32 = arith.constant 0 : i32
    %c0_i32_0 = arith.constant 0 : i32
    %c0_i32_1 = arith.constant 0 : i32
    return %c0_i32, %c0_i32_0 : i32, i32
  }
  func.func @transform_4(%arg0: i32, %arg1: i32) -> (i32, i32, i32, i32) {
    %c0_i32 = arith.constant 0 : i32
    %c0_i32_0 = arith.constant 0 : i32
    %c0_i32_1 = arith.constant 0 : i32
    return %arg0, %arg1, %c0_i32, %c0_i32_0 : i32, i32, i32, i32
  }
  func.func @transform_5(%arg0: i32, %arg1: i32) -> (i32, i32, i32) {
    %c0_i32 = arith.constant 0 : i32
    %c0_i32_0 = arith.constant 0 : i32
    %c0_i32_1 = arith.constant 0 : i32
    return %arg0, %c0_i32, %c0_i32_0 : i32, i32, i32
  }
}

</mosaic_0001>

<bundles_post_ra>
// kernel: disp_head_forward.1
= control target key start
LH: loop header
LB: loop body
LE: loop exit
PB: predicated region body
PF: predicated region fallthrough
CT: control target
= control target key end

     0   :  { %s2285_s0 = inlined_call_operand.vmem [shape: f32[36], index: 0, kind: input, shape index: {}]   ;;  %s2286_s1 = inlined_call_operand.<no memory space> [shape: f32[1], index: 1, kind: input, shape index: {}]   ;;  %s2287_s2 = inlined_call_operand.vmem [shape: f32[32,16], index: 2, kind: input, shape index: {}]   ;;  %s2288_s3 = inlined_call_operand.hbm [shape: f32[16,32], index: 3, kind: input, shape index: {}]   ;;  %s2289_s4 = inlined_call_operand.hbm [shape: f32[2,4,16,16], index: 4, kind: input, shape index: {}]   ;;  %s2290_s5 = inlined_call_operand.vmem [shape: f32[2,8,128], index: 5, kind: output, shape index: {}]  }
   0x1   :  { %2291 = sst [smem:[#allocation15_spill]] %s2285_s0 }
   0x2   :  { %2292 = sst [smem:[#allocation16_spill]] %s2288_s3 }
   0x3   :  { %10 = sst [smem:[#allocation5]] %s2286_s1 }
   0x4   :  { %11 = vsyncpa [#allocation8], 0 }
   0x5   :  { %12 = vsyncpa [#allocation7], 0 }
   0x6   :  { %13 = vsyncpa [#allocation11], 0 }
   0x7   :  { %15 = vsyncpa [#allocation11 + $0x1], 0  ;;  %s1699_s20 = smov 0   ;;  %s1701_s21 = smov 0  }
   0x8   :  { %s1703_s22 = smov 0   ;;  %s1705_s23 = smov 0  }
   0x9   :  { %s1707_s24 = smov 0   ;;  %s1709_s25 = smov 0  }
   0xa LB: > { %s1363_s1 = sadd.s32 4294967295, %s1653_s25   ;;  %s126_s26 = sadd.s32 1, %s1641_s22  ;;  %s1653_s25 = sphi %s1709_s25, %s21_s25   ;;  %s1649_s24 = sphi %s1707_s24, %s2303_s24   ;;  %s1645_s23 = sphi %s1705_s23, %s2302_s23   ;;  %s1641_s22 = sphi %s1703_s22, %s2301_s22   ;;  %s1637_s21 = sphi %s1701_s21, %s2300_s21   ;;  %s1633_s20 = sphi %s1699_s20, %s2299_s20  }
   0xb   : > { %p133_p0 = scmp.ne.s32.totalorder %s1641_s22, %s1637_s21  ;;  %p134_p1 = scmp.eq.s32.totalorder %s1653_s25, 0 }
   0xc   : > { %p139_p2 = scmp.ne.s32.totalorder %s1637_s21, %s1633_s20  ;;  %p1733_p3 = scmp.eq.s32.totalorder %s1363_s1, 0 }
   0xd   : > { %p135_p4 = por %p134_p1, %p133_p0  ;;  %p1365_p5 = scmp.ge.s32.totalorder %s1653_s25, 1 }
   0xe   : > { %p1740_p6 = por %p1733_p3, %p139_p2  ;;  %p176_p7 = scmp.lt.s32.totalorder %s1653_s25, 3 }
   0xf   : > { %s2295_s0 = sld [smem:[#allocation15_spill]]  ;;  %p1450_p10 = scmp.lt.s32.totalorder %s1653_s25, 2 }
  0x10   : > { %p1748_p8 = pnand %p1365_p5, %p176_p7  ;;  %s2297_s3 = sld [smem:[#allocation16_spill]] }
  0x11   : > { %p1760_p12 = pnand %p1450_p10, %p135_p4  ;;  %s1655_s12 = smov [#allocation9]  }
  0x12   : > { %p1437_p9 = pneg %p1748_p8  ;;  %s205_s13 = sshll.u32 %s1655_s12, 4  ;;  %s206_s13 = int_to_ptr.vmem [resolvable:$true] %s205_s13 }
  0x13   : > { %s1656_s14 = smov [#allocation6]   ;;  %s1657_s15 = smov 128  }
  0x14   : > { %p1438_p11 = pnand %p1437_p9, %p1733_p3  ;;  %s1658_s16 = smov 8  }
  0x15   : > { %s188_s6 = sshll.u32 %s2295_s0, 4  ;;  %s219_s17 = sand.u32 1, %s1641_s22   ;;  %s189_s6 = int_to_ptr.vmem [resolvable:$true] %s188_s6 }
  0x16   : > { %s203_s10 = sshll.u32 %s2297_s3, 4  ;;  %s33_s18 = sadd.s32 1, %s1649_s24  ;;  %s204_s10 = int_to_ptr.hbm [resolvable:$true] %s203_s10 }
  0x17   : > { %1440 = dma.vmem_to_smem (!%p1438_p11), %s189_s6, 16, %s1656_s14, [#allocation8]  }
  0x18   : > { %1443 = dma.hbm_to_vmem [thread:$0]  (!%p1438_p11), %s204_s10, 256, %s206_s13, [#allocation7], %s1657_s15, %s1657_s15, %s1658_s16  }
  0x19   : > { %p35_p13 = scmp.ge.s32.totalorder %s33_s18, 2  ;;  %s1369_s19 = sshll.u32 %s219_s17, 6 }
  0x1a   : > { %s1422_s20 = sshll.u32 %s1649_s24, 6  ;;  %s223_s6 = scalar_lea.vmem [#allocation10], %s1369_s19 }
  0x1b   : > { %s2305_s18 = smov (%p35_p13, %s33_s18), 0  ;;  %s231_s30 = scalar_lea.hbm %s2289_s4, %s1422_s20 }
  0x1c   : > { %s234_s8 = sshll.u32 %s223_s6, 4  ;;  %s121_s9 = ssub.s32 %s1649_s24, %s2305_s18  ;;  %s235_s8 = int_to_ptr.vmem [resolvable:$true] %s234_s8 }
  0x1d   : > { %s232_s12 = sshll.u32 %s231_s30, 4  ;;  %p124_p0 = scmp.eq.s32.totalorder %s121_s9, 0  ;;  %s233_s12 = int_to_ptr.hbm [resolvable:$true] %s232_s12 }
  0x1e   : > { %s220_s13 = scalar_lea.sflag [#allocation11], %s219_s17  ;;  %246 = sbr.rel (%p1748_p8) target bundleno = 967 (0x3c7), region = 40 }
  0x1f   : > { %s1777_s10 = scalar_select %p124_p0, %s1641_s22, %s126_s26  }
  0x20   : > { %1447 = dma.hbm_to_vmem [thread:$0]  (!%p1760_p12), %s233_s12, 1024, %s235_s8, %s220_s13, %s1657_s15, %s1657_s15, %s1658_s16  }
  0x23   : > { %1620 = dma.done.wait (%p1733_p3), [#allocation8], 16  }
  0x24   : > { %1622 = vsyncadd (%p1733_p3), [#allocation8], 4294967280 }
  0x25   : > { %1624 = dma.done.wait (%p1733_p3), [#allocation7], 256  }
  0x26   : > { %1626 = vsyncadd (%p1733_p3), [#allocation7], 4294967040  ;;  %s258_s26 = sand.u32 1, %s1637_s21  }
  0x27   : > { %s1375_s11 = sshll.u32 %s258_s26, 6  ;;  %s259_s14 = scalar_lea.sflag [#allocation11], %s258_s26 }
  0x28   : > { %s262_s15 = scalar_lea.vmem [#allocation10], %s1375_s11 }
  0x29   : > { %1628 = dma.done.wait (%p1740_p6), %s259_s14, 1024  }
  0x2a   : > { %1630 = vsyncadd (%p1740_p6), %s259_s14, 4294966272 }
  0x2b   : > { %268 = sfence }
  0x2c   : > { %v1796_v0 = vld [vmem:[%s262_s15] sm:$0xff]  ;;  %v1798_v1 = vld [vmem:[%s262_s15 + $0x10] sm:$0xff]  ;;  %s1659_s7 = smov 16   ;;  %v1808_v3 = vld [vmem:[%s262_s15 + $0x8] sm:$0xff]  ;;  %vm319_vm0 = vcmask 1047680   ;;  %s1660_s27 = smov 113   ;;  %v306_v41 = vlaneseq }
  0x2d   : > { %320 = vrot.lane.b32.xlu0 %v1796_v0, %s1659_s7  ;;  %415 = vrot.lane.b32.xlu1 %v1798_v1, %s1659_s7  ;;  %v1804_v2 = vld [vmem:[%s262_s15 + $0x20] sm:$0xff]  ;;  %v1810_v4 = vld [vmem:[%s262_s15 + $0x18] sm:$0xff]  ;;  %s1661_s28 = smov 127   ;;  %vm299_vm1 = vcmask 130048   ;;  %v1662_v40 = vmov 0.0   ;;  %s1882_s16 = sld [smem:[#allocation6]] }
  0x2e   : > { %511 = vrot.lane.b32.xlu2 %v1804_v2, %s1659_s7  ;;  %v1812_v5 = vld [vmem:[%s262_s15 + $0x28] sm:$0xff]  ;;  %v1820_v6 = vld [vmem:[%s262_s15 + $0x38] sm:$0xff]  ;;  %v1822_v7 = vld [vmem:[%s262_s15 + $0x30] sm:$0xff]  ;;  %300 = vst.msk [vmem:[#allocation2] sm:$0xff] %vm299_vm1, %v1662_v40  ;;  %s1884_s17 = sld [smem:[#allocation6 + $0x3]]  ;;  %v1899_v42 = vand.u32 127, %v306_v41 }
  0x2f   : > { %302 = vst.msk [vmem:[#allocation3] sm:$0xff] %vm299_vm1, %v1662_v40  ;;  %s1886_s19 = sld [smem:[#allocation6 + $0x6]]  ;;  %p291_p1 = scmp.lt.s32.totalorder %s1645_s23, 1 }
  0x30   : > { %304 = vst.msk [vmem:[#allocation4] sm:$0xff] %vm299_vm1, %v1662_v40  ;;  %s1888_s20 = sld [smem:[#allocation6 + $0x2]]  ;;  %vm308_vm2 = vcmp.ge.s32.totalorder %v1899_v42, 1  ;;  %vm309_vm3 = vcmp.le.s32.totalorder %v1899_v42, 14 }
  0x31   : > { %301 = vst.msk [vmem:[#allocation2 + $0x8] sm:$0xff] %vm299_vm1, %v1662_v40  ;;  %s1890_s1 = sld [smem:[#allocation6 + $0x5]]  ;;  %s2307_s23 = smov (!%p291_p1, %s1645_s23), 1 }
  0x32   : > { %303 = vst.msk [vmem:[#allocation3 + $0x8] sm:$0xff] %vm299_vm1, %v1662_v40  ;;  %s1892_s29 = sld [smem:[#allocation6 + $0x1]] }
  0x33   : > { %305 = vst.msk [vmem:[#allocation4 + $0x8] sm:$0xff] %vm299_vm1, %v1662_v40  ;;  %s1894_s30 = sld [smem:[#allocation6 + $0x4]]  ;;  %v351_v45 = vstv %s1882_s16 }
  0x34   : > { %s1896_s6 = sld [smem:[#allocation6 + $0x7]]  ;;  %v372_v47 = vstv %s1884_s17 }
  0x35   : > { %323 = vrot.lane.b32.xlu0 %v1808_v3, %s1659_s7  ;;  %418 = vrot.lane.b32.xlu1 %v1810_v4, %s1659_s7  ;;  %s1901_s8 = sld [smem:[#allocation6 + $0x8]]  ;;  %v393_v48 = vstv %s1886_s19  ;;  %v311_v55 = vld [vmem:[#allocation2] sm:$0xff] }
  0x36   : > { %514 = vrot.lane.b32.xlu2 %v1812_v5, %s1659_s7  ;;  %s1903_s9 = sld [smem:[#allocation6 + $0x9]]  ;;  %v365_v58 = vstv %s1888_s20  ;;  %v313_v60 = vld [vmem:[#allocation3] sm:$0xff] }
  0x37   : > { %s1905_s12 = sld [smem:[#allocation6 + $0xc]]  ;;  %v386_v59 = vstv %s1890_s1  ;;  %v315_v61 = vld [vmem:[#allocation4] sm:$0xff] }
  0x38   : > { %s1907_s13 = sld [smem:[#allocation6 + $0xf]]  ;;  %v358_v49 = vstv %s1892_s29 }
  0x39   : > { %s1910_s26 = sld [smem:[#allocation6 + $0xa]]  ;;  %v379_v50 = vstv %s1894_s30  ;;  %v359_v63 = vmul.f32 %v358_v49, %v1796_v0 }
  0x3a   : > { %s1912_s11 = sld [smem:[#allocation6 + $0xd]]  ;;  %v400_v51 = vstv %s1896_s6  ;;  %v316_v40 = vld [vmem:[#allocation4 + $0x8] sm:$0xff] }
  0x3b   : > { %s1914_s14 = sld [smem:[#allocation6 + $0x10]]  ;;  %v407_v62 = vstv %s1901_s8 }
  0x3c   : > { %s1919_s15 = sld [smem:[#allocation6 + $0xb]] }
  0x3d   : > { %610 = vrot.lane.b32.xlu1 %v1820_v6, %s1659_s7  ;;  %607 = vrot.lane.b32.xlu0 %v1822_v7, %s1659_s7  ;;  %s1941_s16 = sld [smem:[#allocation6 + $0x17]] }
  0x3e   : > { %s1948_s17 = sld [smem:[#allocation6 + $0x1a]] }
  0x3f   : > { %s1953_s19 = sld [smem:[#allocation6 + $0x1b]] }
  0x40   : > { %s1958_s29 = sld [smem:[#allocation6 + $0x1e]] }
  0x41   : > { %s1963_s30 = sld [smem:[#allocation6 + $0x21]] }
  0x42   : > { %s1970_s6 = sld [smem:[#allocation6 + $0x12]] }
  0x43   : > { %s1998_s0 = sld [smem:[#allocation6 + $0x15]] }
  0x44   : > { %s2009_s3 = sld [smem:[#allocation6 + $0x18]] }
  0x45   : > { %s2042_s20 = sld [smem:[#allocation6 + $0x1f]] }
  0x46   : > { %s2049_s1 = sld [smem:[#allocation6 + $0x20]] }
  0x47   : > { %s2063_s8 = sld [smem:[#allocation6 + $0x22]] }
  0x88   : > { %v512_v8 = vpop.permute.xlu2 %511 }
  0x89   : > { %v513_v19 = vsel %vm319_vm0, %v512_v8, %v1804_v2  ;;  %v380_v8 = vmul.f32 %v379_v50, %v1796_v0 }
  0x90   : > { %v515_v13 = vpop.permute.xlu2 %514 }
  0x91   : > { %v516_v14 = vsel %vm319_vm0, %v515_v13, %v1812_v5  ;;  %v489_v13 = vstv %s1907_s13 }
  0x9f   : > { %v321_v9 = vpop.permute.xlu0 %320  ;;  %v416_v10 = vpop.permute.xlu1 %415 }
  0xa0   : > { %v322_v11 = vsel %vm319_vm0, %v321_v9, %v1796_v0  ;;  %v417_v12 = vsel %vm319_vm0, %v416_v10, %v1798_v1  ;;  %v401_v9 = vmul.f32 %v400_v51, %v1796_v0 }
  0xa1   : > { %326 = vrot.lane.b32.xlu2 %v322_v11, %s1659_s7  ;;  %421 = vrot.lane.b32.xlu1 %v417_v12, %s1659_s7  ;;  %v447_v11 = vstv %s1903_s9  ;;  %v468_v12 = vstv %s1905_s12  ;;  %s2035_s9 = sld [smem:[#allocation6 + $0x1c]] }
  0xa2   : > { %s2039_s12 = sld [smem:[#allocation6 + $0x1d]] }
  0xa7   : > { %v324_v15 = vpop.permute.xlu0 %323  ;;  %v419_v16 = vpop.permute.xlu1 %418 }
  0xa8   : > { %v325_v17 = vsel %vm319_vm0, %v324_v15, %v1808_v3  ;;  %v420_v18 = vsel %vm319_vm0, %v419_v16, %v1810_v4  ;;  %v360_v15 = vmul.f32 %v358_v49, %v1808_v3  ;;  %v454_v16 = vstv %s1910_s26  ;;  %s1980_s26 = sld [smem:[#allocation6 + $0x13]] }
  0xa9   : > { %328 = vrot.lane.b32.xlu0 %v325_v17, %s1659_s7  ;;  %519 = vrot.lane.b32.xlu1 %v516_v14, %s1659_s7  ;;  %v475_v17 = vstv %s1912_s11  ;;  %s1984_s11 = sld [smem:[#allocation6 + $0x16]]  ;;  %v599_v49 = vstv %s1948_s17 }
  0xaa   : > { %423 = vrot.lane.b32.xlu2 %v420_v18, %s1659_s7 }
  0xaf   : > { %v608_v20 = vpop.permute.xlu0 %607  ;;  %v611_v22 = vpop.permute.xlu1 %610 }
  0xb0   : > { %v609_v21 = vsel %vm319_vm0, %v608_v20, %v1822_v7  ;;  %v612_v23 = vsel %vm319_vm0, %v611_v22, %v1820_v6  ;;  %v496_v20 = vstv %s1914_s14  ;;  %v461_v22 = vstv %s1919_s15  ;;  %s1991_s14 = sld [smem:[#allocation6 + $0x19]] }
  0xb1   : > { %517 = vrot.lane.b32.xlu0 %v513_v19, %s1659_s7 }
  0xb2   : > { %613 = vrot.lane.b32.xlu2 %v609_v21, %s1659_s7 }
  0xb9   : > { %615 = vrot.lane.b32.xlu0 %v612_v23, %s1659_s7  ;;  %s1923_s7 = sld [smem:[#allocation6 + $0xe]]  ;;  %v381_v23 = vmul.f32 %v379_v50, %v1808_v3 }
  0xfb   : > { %v327_v24 = vpop.permute.xlu2 %326 }
  0xfc   : > { %v330_v25 = vsel %vm319_vm0, %v327_v24, %v1796_v0  ;;  %v402_v24 = vmul.f32 %v400_v51, %v1808_v3 }
  0xfd   : > { %334 = vrot.lane.b32.xlu1 %v330_v25, %s1660_s27  ;;  %342 = vrot.lane.b32.xlu0 %v330_v25, %s1661_s28  ;;  %v312_v25 = vld [vmem:[#allocation2 + $0x8] sm:$0xff] }
 0x104   : > { %v424_v26 = vpop.permute.xlu2 %423 }
 0x105   : > { %v426_v27 = vsel %vm319_vm0, %v424_v26, %v1810_v4 }
 0x106   : > { %431 = vrot.lane.b32.xlu0 %v426_v27, %s1660_s27 }
 0x10c   : > { %v614_v36 = vpop.permute.xlu2 %613 }
 0x10d   : > { %v617_v37 = vsel %vm319_vm0, %v614_v36, %v1822_v7 }
 0x113   : > { %v422_v30 = vpop.permute.xlu1 %421 }
 0x114   : > { %v425_v31 = vsel %vm319_vm0, %v422_v30, %v1798_v1  ;;  %v1968_v30 = vmul.f32 %v1798_v1, %v454_v16 }
 0x11b   : > { %v329_v28 = vpop.permute.xlu0 %328  ;;  %v520_v34 = vpop.permute.xlu1 %519 }
 0x11c   : > { %v331_v29 = vsel %vm319_vm0, %v329_v28, %v1808_v3  ;;  %v522_v35 = vsel %vm319_vm0, %v520_v34, %v1812_v5  ;;  %v1975_v3 = vmul.f32 %v1798_v1, %v475_v17  ;;  %v1978_v34 = vmul.f32 %v1798_v1, %v496_v20 }
 0x11d   : > { %344 = vrot.lane.b32.xlu1 %v331_v29, %s1661_s28  ;;  %336 = vrot.lane.b32.xlu2 %v331_v29, %s1660_s27 }
 0x123   : > { %v518_v32 = vpop.permute.xlu0 %517 }
 0x124   : > { %v521_v33 = vsel %vm319_vm0, %v518_v32, %v1804_v2 }
 0x125   : > { %437 = vrot.lane.b32.xlu1 %v425_v31, %s1661_s28  ;;  %429 = vrot.lane.b32.xlu2 %v425_v31, %s1660_s27 }
 0x126   : > { %525 = vrot.lane.b32.xlu0 %v521_v33, %s1660_s27 }
 0x12b   : > { %v616_v38 = vpop.permute.xlu0 %615 }
 0x12c   : > { %v618_v39 = vsel %vm319_vm0, %v616_v38, %v1820_v6  ;;  %vm1243_vm0 = vcmask 261120  }
 0x12d   : > { %527 = vrot.lane.b32.xlu1 %v522_v35, %s1660_s27  ;;  %439 = vrot.lane.b32.xlu2 %v426_v27, %s1661_s28  ;;  %v482_v27 = vstv %s1923_s7 }
 0x12e   : > { %535 = vrot.lane.b32.xlu0 %v522_v35, %s1661_s28 }
 0x135   : > { %621 = vrot.lane.b32.xlu1 %v617_v37, %s1660_s27  ;;  %533 = vrot.lane.b32.xlu2 %v521_v33, %s1661_s28  ;;  %v314_v33 = vld [vmem:[#allocation3 + $0x8] sm:$0xff] }
 0x136   : > { %629 = vrot.lane.b32.xlu0 %v617_v37, %s1661_s28 }
 0x13d   : > { %631 = vrot.lane.b32.xlu1 %v618_v39, %s1661_s28  ;;  %623 = vrot.lane.b32.xlu2 %v618_v39, %s1660_s27  ;;  %s1928_s27 = sld [smem:[#allocation6 + $0x11]] }
 0x13e   : > { %s1935_s28 = sld [smem:[#allocation6 + $0x14]] }
 0x143   : > { %v503_v28 = vstv %s1928_s27 }
 0x16f   : > { %v335_v44 = vpop.permute.xlu1 %334  ;;  %v343_v52 = vpop.permute.xlu0 %342 }
 0x170   : > { %v340_v46 = vsel %vm308_vm2, %v335_v44, 0.0  ;;  %v348_v19 = vsel %vm309_vm3, %v343_v52, 0.0  ;;  %v2004_v52 = vmul.f32 %v1810_v4, %v475_v17 }
 0x171   : > { %v352_v53 = vmul.f32 %v351_v45, %v340_v46  ;;  %v373_v56 = vmul.f32 %v372_v47, %v340_v46  ;;  %v394_v57 = vmul.f32 %v393_v48, %v340_v46  ;;  %v366_v32 = vmul.f32 %v365_v58, %v348_v19 }
 0x172   : > { %v387_v36 = vmul.f32 %v386_v59, %v348_v19  ;;  %v408_v39 = vmul.f32 %v407_v62, %v348_v19 }
 0x173   : > { %v354_v14 = vadd.f32 %v352_v53, %v311_v55  ;;  %v375_v0 = vadd.f32 %v373_v56, %v313_v60  ;;  %v396_v18 = vadd.f32 %v394_v57, %v315_v61  ;;  %v2007_v53 = vmul.f32 %v1810_v4, %v496_v20 }
 0x174   : > { %v660_v20 = vstv %s1958_s29  ;;  %s1376_s29 = sshll.u32 %s2307_s23, 3  ;;  %s1663_s23 = smov 32  }
 0x175   : > { %v361_v31 = vadd.f32 %v359_v63, %v354_v14  ;;  %v382_v35 = vadd.f32 %v380_v8, %v375_v0  ;;  %v403_v37 = vadd.f32 %v401_v9, %v396_v18  ;;  %v639_v8 = vstv %s1953_s19 }
 0x177   : > { %v337_v43 = vpop.permute.xlu2 %336  ;;  %v368_v50 = vadd.f32 %v366_v32, %v361_v31  ;;  %v389_v55 = vadd.f32 %v387_v36, %v382_v35  ;;  %v410_v56 = vadd.f32 %v408_v39, %v403_v37  ;;  %v564_v32 = vstv %s1998_s0  ;;  %s2068_s0 = sld [smem:[#allocation6 + $0x23]] }
 0x178   : > { %v341_v10 = vsel %vm308_vm2, %v337_v43, 0.0  ;;  %v432_v29 = vpop.permute.xlu0 %431 }
 0x179   : > { %v353_v21 = vmul.f32 %v351_v45, %v341_v10  ;;  %v374_v26 = vmul.f32 %v372_v47, %v341_v10  ;;  %v395_v38 = vmul.f32 %v393_v48, %v341_v10  ;;  %v557_v45 = vstv %s1935_s28 }
 0x17a   : > { %v436_v1 = vsel %vm308_vm2, %v432_v29, 0.0  ;;  %v578_v47 = vstv %s1941_s16  ;;  %v1996_v48 = vmul.f32 %v1810_v4, %v454_v16 }
 0x17b   : > { %v355_v43 = vadd.f32 %v353_v21, %v312_v25  ;;  %v376_v46 = vadd.f32 %v374_v26, %v314_v33  ;;  %v397_v57 = vadd.f32 %v395_v38, %v316_v40  ;;  %v449_v60 = vmul.f32 %v447_v11, %v436_v1 }
 0x17c   : > { %v470_v63 = vmul.f32 %v468_v12, %v436_v1  ;;  %v491_v4 = vmul.f32 %v489_v13, %v436_v1  ;;  %v681_v21 = vstv %s1963_s30  ;;  %v592_v26 = vstv %s1991_s14  ;;  %s1665_s14 = smov 96  }
 0x17d   : > { %v362_v61 = vadd.f32 %v360_v15, %v355_v43  ;;  %v383_v16 = vadd.f32 %v381_v23, %v376_v46  ;;  %v404_v19 = vadd.f32 %v402_v24, %v397_v57  ;;  %v571_v23 = vstv %s1984_s11  ;;  %s1664_s11 = smov 64  }
 0x17e   : > { %v585_v33 = vstv %s2009_s3  ;;  %v2052_v35 = vmul.f32 %v1804_v2, %v571_v23  ;;  %v2055_v36 = vmul.f32 %v1804_v2, %v592_v26  ;;  %v2061_v38 = vmul.f32 %v1812_v5, %v571_v23  ;;  %s2176_s3 = sld [smem:[#allocation5]] }
 0x17f   : > { %v1931_v54 = vpop.permute.xlu2 %429  ;;  %v594_v1 = vmul.f32 %v1812_v5, %v592_v26  ;;  %v695_v23 = vstv %s2068_s0 }
 0x180   : > { %v435_v51 = vsel %vm308_vm2, %v1931_v54, 0.0 }
 0x181   : > { %v448_v9 = vmul.f32 %v447_v11, %v435_v51  ;;  %v469_v10 = vmul.f32 %v468_v12, %v435_v51  ;;  %v490_v17 = vmul.f32 %v489_v13, %v435_v51  ;;  %v550_v11 = vstv %s1980_s26  ;;  %s2261_s26 = scalar_lea.vmem %s2290_s5, %s1376_s29 }
 0x182   : > { %v2045_v31 = vmul.f32 %v1804_v2, %v550_v11  ;;  %v2058_v37 = vmul.f32 %v1812_v5, %v550_v11 }
 0x183   : > { %v471_v13 = vadd.f32 %v469_v10, %v389_v55 }
 0x185   : > { %v478_v55 = vadd.f32 %v1975_v3, %v471_v13 }
 0x187   : > { %v440_v44 = vpop.permute.xlu2 %439 }
 0x188   : > { %v444_v39 = vsel %vm309_vm3, %v440_v44, 0.0 }
 0x18f   : > { %v345_v54 = vpop.permute.xlu1 %344  ;;  %v534_v24 = vpop.permute.xlu2 %533 }
 0x190   : > { %v349_v14 = vsel %vm309_vm3, %v345_v54, 0.0  ;;  %v463_v54 = vmul.f32 %v461_v22, %v444_v39 }
 0x191   : > { %v367_v0 = vmul.f32 %v365_v58, %v349_v14  ;;  %v388_v15 = vmul.f32 %v386_v59, %v349_v14  ;;  %v409_v18 = vmul.f32 %v407_v62, %v349_v14  ;;  %v450_v58 = vadd.f32 %v448_v9, %v368_v50 }
 0x192   : > { %v543_v59 = vstv %s1970_s6  ;;  %v492_v62 = vadd.f32 %v490_v17, %v410_v56 }
 0x193   : > { %v369_v12 = vadd.f32 %v367_v0, %v362_v61  ;;  %v390_v25 = vadd.f32 %v388_v15, %v383_v16  ;;  %v411_v29 = vadd.f32 %v409_v18, %v404_v19  ;;  %v457_v51 = vadd.f32 %v1968_v30, %v450_v58 }
 0x194   : > { %v484_v61 = vmul.f32 %v482_v27, %v444_v39  ;;  %v505_v30 = vmul.f32 %v503_v28, %v444_v39  ;;  %v674_v0 = vstv %s2049_s1 }
 0x195   : > { %v451_v40 = vadd.f32 %v449_v60, %v369_v12  ;;  %v472_v43 = vadd.f32 %v470_v63, %v390_v25  ;;  %v493_v46 = vadd.f32 %v491_v4, %v411_v29  ;;  %v499_v60 = vadd.f32 %v1978_v34, %v492_v62 }
 0x196   : > { %v646_v34 = vstv %s2035_s9 }
 0x197   : > { %v438_v2 = vpop.permute.xlu1 %437  ;;  %v458_v63 = vadd.f32 %v1996_v48, %v451_v40  ;;  %v479_v4 = vadd.f32 %v2004_v52, %v472_v43  ;;  %v500_v10 = vadd.f32 %v2007_v53, %v493_v46  ;;  %v688_v52 = vstv %s2063_s8  ;;  %v624_v19 = vpop.permute.xlu2 %623 }
 0x198   : > { %v443_v50 = vsel %vm309_vm3, %v438_v2, 0.0  ;;  %v526_v56 = vpop.permute.xlu0 %525  ;;  %v539_v46 = vsel %vm309_vm3, %v534_v24, 0.0 }
 0x199   : > { %v462_v44 = vmul.f32 %v461_v22, %v443_v50  ;;  %v483_v57 = vmul.f32 %v482_v27, %v443_v50  ;;  %v504_v5 = vmul.f32 %v503_v28, %v443_v50  ;;  %v531_v3 = vsel %vm308_vm2, %v526_v56, 0.0 }
 0x19a   : > { %v653_v22 = vstv %s2039_s12  ;;  %v544_v17 = vmul.f32 %v543_v59, %v531_v3  ;;  %v2095_v27 = vmul.f32 %v1822_v7, %v646_v34  ;;  %v667_v28 = vstv %s2042_s20 }
 0x19b   : > { %v464_v9 = vadd.f32 %v462_v44, %v457_v51  ;;  %v485_v14 = vadd.f32 %v483_v57, %v478_v55  ;;  %v506_v16 = vadd.f32 %v504_v5, %v499_v60  ;;  %v565_v15 = vmul.f32 %v564_v32, %v531_v3 }
 0x19c   : > { %v586_v18 = vmul.f32 %v585_v33, %v531_v3  ;;  %v2100_v48 = vmul.f32 %v1822_v7, %v667_v28  ;;  %v465_v53 = vadd.f32 %v463_v54, %v458_v63  ;;  %v486_v25 = vadd.f32 %v484_v61, %v479_v4 }
 0x19d   : > { %v546_v11 = vadd.f32 %v544_v17, %v464_v9  ;;  %v567_v26 = vadd.f32 %v565_v15, %v485_v14  ;;  %v507_v13 = vadd.f32 %v505_v30, %v500_v10  ;;  %v628_v50 = vsel %vm308_vm2, %v624_v19, 0.0  ;;  %v778_v19 = vld [vmem:[#allocation9 + $0x8] sm:$0xff] }
 0x19e   : > { %v588_v58 = vadd.f32 %v586_v18, %v506_v16  ;;  %v689_v51 = vmul.f32 %v1822_v7, %v688_v52  ;;  %v648_v55 = vmul.f32 %v1820_v6, %v646_v34  ;;  %v558_v61 = vmul.f32 %v557_v45, %v539_v46 }
 0x19f   : > { %v528_v12 = vpop.permute.xlu1 %527  ;;  %v574_v44 = vadd.f32 %v2052_v35, %v567_v26  ;;  %v579_v30 = vmul.f32 %v578_v47, %v539_v46  ;;  %v600_v35 = vmul.f32 %v599_v49, %v539_v46  ;;  %v641_v3 = vmul.f32 %v639_v8, %v628_v50 }
 0x1a0   : > { %v532_v29 = vsel %vm308_vm2, %v528_v12, 0.0  ;;  %v536_v62 = vpop.permute.xlu0 %535  ;;  %v595_v24 = vadd.f32 %v2055_v36, %v588_v58  ;;  %v669_v36 = vmul.f32 %v1820_v6, %v667_v28  ;;  %v683_v9 = vmul.f32 %v681_v21, %v628_v50 }
 0x1a1   : > { %v545_v39 = vmul.f32 %v543_v59, %v532_v29  ;;  %v566_v40 = vmul.f32 %v564_v32, %v532_v29  ;;  %v587_v43 = vmul.f32 %v585_v33, %v532_v29  ;;  %v540_v2 = vsel %vm309_vm3, %v536_v62, 0.0 }
 0x1a2   : > { %v553_v59 = vadd.f32 %v2045_v31, %v546_v11  ;;  %v559_v57 = vmul.f32 %v557_v45, %v540_v2  ;;  %v580_v60 = vmul.f32 %v578_v47, %v540_v2  ;;  %v601_v31 = vmul.f32 %v599_v49, %v540_v2  ;;  %v777_v11 = vld [vmem:[#allocation9] sm:$0xff] }
 0x1a3   : > { %v547_v32 = vadd.f32 %v545_v39, %v465_v53  ;;  %v568_v33 = vadd.f32 %v566_v40, %v486_v25  ;;  %v589_v56 = vadd.f32 %v587_v43, %v507_v13  ;;  %v581_v10 = vadd.f32 %v579_v30, %v574_v44 }
 0x1a4   : > { %v560_v45 = vadd.f32 %v558_v61, %v553_v59  ;;  %v602_v14 = vadd.f32 %v600_v35, %v595_v24  ;;  %v690_v25 = vmul.f32 %v1820_v6, %v688_v52  ;;  %v2150_v26 = vshrl.u32 %v306_v41, 7 }
 0x1a5   : > { %v554_v7 = vadd.f32 %v2058_v37, %v547_v32  ;;  %v575_v5 = vadd.f32 %v2061_v38, %v568_v33  ;;  %v596_v54 = vadd.f32 %v594_v1, %v589_v56  ;;  %v662_v1 = vmul.f32 %v660_v20, %v628_v50 }
 0x1a6   : > { %v2159_v62 = vand.u32 4294901760, %v778_v19  ;;  %v2161_v39 = vand.u32 4294901760, %v777_v11  ;;  %v712_v46 = vadd.s32 8, %v2150_v26  ;;  %vm713_vm4 = vcmp.ge.s32.totalorder %v2150_v26, 1 }
 0x1a7   : > { %v561_v63 = vadd.f32 %v559_v57, %v554_v7  ;;  %v582_v37 = vadd.f32 %v580_v60, %v575_v5  ;;  %v603_v4 = vadd.f32 %v601_v31, %v596_v54  ;;  %v622_v38 = vpop.permute.xlu1 %621  ;;  %vm717_vm5 = vcmp.lt.s32.totalorder %v2150_v26, 1 }
 0x1a8   : > { %v627_v47 = vsel %vm308_vm2, %v622_v38, 0.0  ;;  %v630_v34 = vpop.permute.xlu0 %629  ;;  %v2169_v50 = vsub.f32 %v777_v11, %v2161_v39  ;;  %1425 = vmatpush.msra.mxu3 %v2159_v62  ;;  %800 = vmatpush.msra.mxu0 %v2159_v62  ;;  %vm723_vm6 = vcmp.le.s32.totalorder %v712_v46, 14  ;;  %vm726_vm7 = vcmp.lt.s32.totalorder %v2150_v26, 7 }
 0x1a9   : > { %v643_v49 = vadd.f32 %v641_v3, %v561_v63  ;;  %v640_v16 = vmul.f32 %v639_v8, %v627_v47  ;;  %v664_v17 = vadd.f32 %v662_v1, %v582_v37  ;;  %v661_v28 = vmul.f32 %v660_v20, %v627_v47 }
 0x1aa   : > { %v682_v15 = vmul.f32 %v681_v21, %v627_v47  ;;  %v635_v18 = vsel %vm309_vm3, %v630_v34, 0.0  ;;  %v685_v12 = vadd.f32 %v683_v9, %v603_v4  ;;  %v842_v44 = vand.u32 4294901760, %v2169_v50  ;;  %1426 = vmatpush.msra.mxu3 %v2161_v39  ;;  %802 = vmatpush.msra.mxu0 %v2161_v39 }
 0x1ab   : > { %v642_v53 = vadd.f32 %v640_v16, %v560_v45  ;;  %v663_v58 = vadd.f32 %v661_v28, %v581_v10  ;;  %v654_v13 = vmul.f32 %v653_v22, %v635_v18  ;;  %v675_v20 = vmul.f32 %v674_v0, %v635_v18 }
 0x1ac   : > { %v684_v8 = vadd.f32 %v682_v15, %v602_v14  ;;  %v696_v29 = vmul.f32 %v695_v23, %v635_v18  ;;  %v650_v41 = vadd.f32 %v648_v55, %v643_v49  ;;  %v671_v52 = vadd.f32 %v669_v36, %v664_v17 }
 0x1ad   : > { %v649_v21 = vadd.f32 %v2095_v27, %v642_v53  ;;  %v670_v40 = vadd.f32 %v2100_v48, %v663_v58  ;;  %v2166_v27 = vsub.f32 %v778_v19, %v2159_v62  ;;  %v692_v59 = vadd.f32 %v690_v25, %v685_v12 }
 0x1ae   : > { %v691_v6 = vadd.f32 %v689_v51, %v684_v8  ;;  %v843_v57 = vsub.f32 %v2169_v50, %v842_v44  ;;  %v736_v4 = vstv %s2176_s3  ;;  %vm1255_vm2 = vcmask 785920  }
 0x1af   : > { %v656_v43 = vadd.f32 %v654_v13, %v649_v21  ;;  %v632_v2 = vpop.permute.xlu1 %631  ;;  %v677_v48 = vadd.f32 %v675_v20, %v670_v40  ;;  %1423 = vmatpush.msra.mxu2 %v2166_v27  ;;  %v836_v42 = vand.u32 4294901760, %v2166_v27  ;;  %871 = vmatpush.msrb.mxu0 %v2166_v27 }
 0x1b0   : > { %v698_v51 = vadd.f32 %v696_v29, %v691_v6  ;;  %v636_v55 = vsel %vm309_vm3, %v632_v2, 0.0  ;;  %v844_v61 = vand.u32 4294901760, %v843_v57  ;;  %vm1261_vm3 = vcmask 1048320  }
 0x1b1   : > { %701 = vst.msk [vmem:[#allocation2] sm:$0xff] %vm299_vm1, %v656_v43  ;;  %v655_v32 = vmul.f32 %v653_v22, %v636_v55  ;;  %v676_v33 = vmul.f32 %v674_v0, %v636_v55  ;;  %v697_v56 = vmul.f32 %v695_v23, %v636_v55  ;;  %1424 = vmatpush.msra.mxu2 %v2169_v50  ;;  %v715_v60 = vrot.slane %v656_v43, 7 }
 0x1b2   : > { %703 = vst.msk [vmem:[#allocation3] sm:$0xff] %vm299_vm1, %v677_v48  ;;  %v837_v24 = vsub.f32 %v2166_v27, %v836_v42  ;;  %v724_v7 = vrot.slane %v698_v51, 1  ;;  %874 = vmatpush.msrb.mxu0 %v2169_v50  ;;  %v975_v27 = vld [vmem:[%s2287_s2] sm:$0xff] }
 0x1b3   : > { %705 = vst.msk [vmem:[#allocation4] sm:$0xff] %vm299_vm1, %v698_v51  ;;  %v657_v22 = vadd.f32 %v655_v32, %v650_v41  ;;  %v678_v0 = vadd.f32 %v676_v33, %v671_v52  ;;  %v699_v23 = vadd.f32 %v697_v56, %v692_v59 }
 0x1b4   : > { %v838_v31 = vand.u32 4294901760, %v837_v24 }
 0x1b5   : > { %702 = vst.msk [vmem:[#allocation2 + $0x8] sm:$0xff] %vm299_vm1, %v657_v22  ;;  %v716_v5 = vrot.slane %v657_v22, 7  ;;  %v725_v54 = vrot.slane %v699_v23, 1 }
 0x1b6   : > { %704 = vst.msk [vmem:[#allocation3 + $0x8] sm:$0xff] %vm299_vm1, %v678_v0  ;;  %839 = vmatpush.msra.mxu1 %v838_v31 }
 0x1b7   : > { %706 = vst.msk [vmem:[#allocation4 + $0x8] sm:$0xff] %vm299_vm1, %v699_v23  ;;  %v718_v30 = vsel %vm717_vm5, %v715_v60, %v716_v5  ;;  %v719_v35 = vsel %vm717_vm5, %v716_v5, %v715_v60  ;;  %v728_v36 = vsel %vm726_vm7, %v725_v54, %v724_v7  ;;  %v727_v1 = vsel %vm726_vm7, %v724_v7, %v725_v54 }
 0x1b8   : > { %v720_v3 = vsel %vm713_vm4, %v719_v35, 0.0  ;;  %v730_v63 = vsel %vm723_vm6, %v728_v36, 0.0  ;;  %v732_v37 = vadd.f32 %v718_v30, %v678_v0  ;;  %845 = vmatpush.msra.mxu1 %v844_v61  ;;  %v976_v36 = vld [vmem:[%s2287_s2 + $0x8] sm:$0xff] }
 0x1b9   : > { %v731_v38 = vadd.f32 %v720_v3, %v677_v48 }
 0x1ba   : > { %v734_v9 = vadd.f32 %v732_v37, %v730_v63  ;;  %901 = vmatpush.msrb.mxu1 %v2159_v62 }
 0x1bb   : > { %v733_v45 = vadd.f32 %v731_v38, %v727_v1  ;;  %v983_v1 = vsel %vm299_vm1, %v976_v36, 0 }
 0x1bc   : > { %v738_v47 = vadd.f32 %v736_v4, %v734_v9  ;;  %903 = vmatpush.msrb.mxu1 %v2161_v39 }
 0x1bd   : > { %v737_v34 = vadd.f32 %v736_v4, %v733_v45 }
 0x1be   : > { %v1419_v49 = vmul.f32 -1.442695, %v738_v47  ;;  %v2239_v47 = vand.u32 4294901760, %v983_v1 }
 0x1bf   : > { %v1418_v10 = vmul.f32 -1.442695, %v737_v34 }
 0x1c0   : > { %1512 = vpow2.f32 %v1419_v49 }
 0x1c1   : > { %1514 = vpow2.f32 %v1418_v10 }
 0x1c6   : > { %v1513_v14 = vpop.eup %1512 }
 0x1c7   : > { %v1515_v16 = vpop.eup %1514  ;;  %v746_v17 = vadd.f32 1.0, %v1513_v14  ;;  %v977_v14 = vld [vmem:[%s2287_s2 + $0x10] sm:$0xff] }
 0x1c8   : > { %v745_v28 = vadd.f32 1.0, %v1515_v16 }
 0x1c9   : > { %1516 = vrcp.f32 %v746_v17  ;;  %v773_v25 = vand.u32 2147483648, %v746_v17  ;;  %v771_v8 = vand.u32 2147483647, %v746_v17  ;;  %vm767_vm10 = vweird.f32 %v746_v17 }
 0x1ca   : > { %1518 = vrcp.f32 %v745_v28  ;;  %v758_v26 = vand.u32 2147483648, %v745_v28  ;;  %v756_v20 = vand.u32 2147483647, %v745_v28  ;;  %vm752_vm11 = vweird.f32 %v745_v28 }
 0x1cb   : > { %v774_v40 = vor.u32 1.1754944e-38, %v773_v25  ;;  %vm772_vm14 = vcmp.eq.f32.partialorder %v771_v8, 8.507059e+37 }
 0x1cc   : > { %v759_v6 = vor.u32 1.1754944e-38, %v758_v26  ;;  %vm757_vm15 = vcmp.eq.f32.partialorder %v756_v20, 8.507059e+37 }
 0x1cf   : > { %v1517_v15 = vpop.eup %1516 }
 0x1d0   : > { %v1519_v18 = vpop.eup %1518  ;;  %v763_v19 = vmul.f32 %v1517_v15, %v746_v17  ;;  %vm768_vm8 = vweird.f32 %v1517_v15 }
 0x1d1   : > { %v748_v11 = vmul.f32 %v1519_v18, %v745_v28  ;;  %vm753_vm9 = vweird.f32 %v1519_v18  ;;  %vm769_vm12 = vmor %vm767_vm10, %vm768_vm8 }
 0x1d2   : > { %v764_v12 = vsub.f32 1.0, %v763_v19  ;;  %vm754_vm13 = vmor %vm752_vm11, %vm753_vm9 }
 0x1d3   : > { %v749_v53 = vsub.f32 1.0, %v748_v11  ;;  %v986_v11 = vsel %vm299_vm1, %v977_v14, 0 }
 0x1d4   : > { %v765_v58 = vmul.f32 %v1517_v15, %v764_v12  ;;  %v1025_v26 = vand.u32 4294901760, %v986_v11 }
 0x1d5   : > { %v750_v13 = vmul.f32 %v1519_v18, %v749_v53 }
 0x1d6   : > { %v766_v21 = vadd.f32 %v1517_v15, %v765_v58 }
 0x1d7   : > { %v751_v29 = vadd.f32 %v1519_v18, %v750_v13  ;;  %v978_v13 = vld [vmem:[%s2287_s2 + $0x18] sm:$0xff] }
 0x1d8   : > { %v770_v41 = vsel %vm769_vm12, %v1517_v15, %v766_v21  ;;  %v1018_v15 = vsub.f32 %v983_v1, %v2239_v47 }
 0x1d9   : > { %v755_v52 = vsel %vm754_vm13, %v1519_v18, %v751_v29  ;;  %v775_v43 = vsel %vm772_vm14, %v774_v40, %v770_v41  ;;  %v1026_v29 = vsub.f32 %v986_v11, %v1025_v26  ;;  %v989_v41 = vsel %vm299_vm1, %v978_v13, 0 }
 0x1da   : > { %v760_v2 = vsel %vm757_vm15, %v759_v6, %v755_v52  ;;  %v783_v46 = vsel %vm299_vm1, %v775_v43, 0  ;;  %v1019_v25 = vand.u32 4294901760, %v1018_v15 }
 0x1db   : > { %v780_v48 = vsel %vm299_vm1, %v760_v2, 0  ;;  %v811_v51 = vand.u32 4294901760, %v783_v46  ;;  %v1027_v2 = vand.u32 4294901760, %v1026_v29 }
 0x1dc   : > { %v803_v55 = vand.u32 4294901760, %v780_v48  ;;  %v1020_v21 = vsub.f32 %v1018_v15, %v1019_v25 }
 0x1dd   : > { %v812_v59 = vsub.f32 %v783_v46, %v811_v51  ;;  %v1033_v46 = vand.u32 4294901760, %v989_v41 }
 0x1de   : > { %847 = vmatmul.f32.vlgmr.msra.gmra.mxu1 %v803_v55  ;;  %v804_v32 = vsub.f32 %v780_v48, %v803_v55  ;;  %v1021_v43 = vand.u32 4294901760, %v1020_v21 }
 0x1df   : > { %882 = vmatmul.f32.vlgmr.msra.gmra.mxu2 %v812_v59  ;;  %v813_v33 = vand.u32 4294901760, %v812_v59  ;;  %963 = vmatpush.msra.mxu1 %v2159_v62 }
 0x1e0   : > { %v805_v56 = vand.u32 4294901760, %v804_v32 }
 0x1e1   : > { %913 = vmatmul.f32.vlgmr.msra.gmra.mxu3 %v813_v33  ;;  %965 = vmatpush.msra.mxu1 %v2161_v39  ;;  %v814_v23 = vsub.f32 %v812_v59, %v813_v33 }
 0x1e2   : > { %v806_v22 = vsub.f32 %v804_v32, %v805_v56 }
 0x1e3   : > { %v815_v24 = vand.u32 4294901760, %v814_v23 }
 0x1e4   : > { %v807_v0 = vand.u32 4294901760, %v806_v22 }
 0x1e6   : > { %808 = vmatmul.f32.vlgmr.msra.gmra.mxu0 %v807_v0  ;;  %851 = vmatmul.f32.gmra.mxu1 %v811_v51 }
 0x1e7   : > { %934 = vmatpush.msra.mxu0 %v836_v42 }
 0x1e9   : > { %938 = vmatpush.msra.mxu0 %v842_v44  ;;  %v980_v44 = vsel %vm299_vm1, %v975_v27, 0  ;;  %vm1249_vm1 = vcmask 523520  }
 0x1ea   : > { %v2232_v54 = vand.u32 4294901760, %v980_v44 }
 0x1ec   : > { %v1010_v37 = vsub.f32 %v980_v44, %v2232_v54 }
 0x1ee   : > { %816 = vmatmul.f32.gmra.mxu0 %v815_v24  ;;  %907 = vmatmul.f32.vlgmr.msrb.gmra.mxu1 %v805_v56  ;;  %v1011_v45 = vand.u32 4294901760, %v1010_v37 }
 0x1f0   : > { %v1012_v28 = vsub.f32 %v1010_v37, %v1011_v45 }
 0x1f2   : > { %v1013_v53 = vand.u32 4294901760, %v1012_v28 }
 0x1f6   : > { %877 = vmatmul.f32.vlgmr.msrb.gmra.mxu0 %v804_v32  ;;  %967 = vmatmul.f32.vlgmr.msra.gmra.mxu1 %v803_v55 }
 0x1fe   : > { %940 = vmatmul.f32.vlgmr.msra.gmra.mxu0 %v803_v55  ;;  %971 = vmatmul.f32.gmra.mxu1 %v811_v51  ;;  %v1034_v55 = vsub.f32 %v989_v41, %v1033_v46 }
 0x200   : > { %v1035_v32 = vand.u32 4294901760, %v1034_v55 }
 0x202   : > { %v1036_v33 = vsub.f32 %v1034_v55, %v1035_v32 }
 0x204   : > { %v1037_v56 = vand.u32 4294901760, %v1036_v33 }
 0x206   : > { %944 = vmatmul.f32.gmra.mxu0 %v811_v51  ;;  %v1028_v51 = vsub.f32 %v1026_v29, %v1027_v2 }
 0x208   : > { %v1029_v59 = vand.u32 4294901760, %v1028_v51 }
 0x25b   : > { %v848_v62 = vpop.f32.mrf.mxu1 }
 0x262   : > { %v883_v63 = vpop.f32.mrf.mxu2 }
 0x263   : > { %v809_v39 = vpop.f32.mrf.mxu0  ;;  %v852_v57 = vpop.f32.mrf.mxu1 }
 0x264   : > { %v849_v50 = vadd.f32 %v848_v62, %v809_v39  ;;  %v914_v9 = vpop.f32.mrf.mxu3 }
 0x26b   : > { %v817_v60 = vpop.f32.mrf.mxu0  ;;  %v908_v7 = vpop.f32.mrf.mxu1 }
 0x26c   : > { %v853_v31 = vadd.f32 %v852_v57, %v817_v60 }
 0x26e   : > { %v884_v4 = vadd.f32 %v883_v63, %v853_v31 }
 0x270   : > { %v915_v49 = vadd.f32 %v914_v9, %v884_v4 }
 0x273   : > { %v878_v5 = vpop.f32.mrf.mxu0  ;;  %v968_v30 = vpop.f32.mrf.mxu1 }
 0x274   : > { %v879_v42 = vadd.f32 %v878_v5, %v849_v50 }
 0x276   : > { %v909_v61 = vadd.f32 %v908_v7, %v879_v42 }
 0x27b   : > { %v941_v35 = vpop.f32.mrf.mxu0  ;;  %v972_v17 = vpop.f32.mrf.mxu1 }
 0x27c   : > { %v942_v3 = vadd.f32 %v941_v35, %v909_v61 }
 0x27e   : > { %v969_v38 = vadd.f32 %v968_v30, %v942_v3 }
 0x280   : > { %v1007_v34 = vand.u32 4294901760, %v969_v38 }
 0x282   : > { %v1063_v19 = vsub.f32 %v969_v38, %v1007_v34 }
 0x283   : > { %v945_v10 = vpop.f32.mrf.mxu0 }
 0x284   : > { %v946_v16 = vadd.f32 %v945_v10, %v915_v49  ;;  %v1064_v8 = vand.u32 4294901760, %v1063_v19 }
 0x286   : > { %v973_v18 = vadd.f32 %v972_v17, %v946_v16  ;;  %v1065_v6 = vsub.f32 %v1063_v19, %v1064_v8 }
 0x288   : > { %v1005_v12 = vand.u32 4294901760, %v973_v18  ;;  %v1066_v48 = vand.u32 4294901760, %v1065_v6 }
 0x28a   : > { %v1057_v58 = vsub.f32 %v973_v18, %v1005_v12  ;;  %1006 = vmatpush.msrb.mxu2 %v1005_v12  ;;  %1141 = vmatpush.msrb.mxu1 %v1005_v12 }
 0x28c   : > { %1008 = vmatpush.msrb.mxu2 %v1007_v34  ;;  %1101 = vmatpush.msrb.mxu0 %v1057_v58  ;;  %v1058_v20 = vand.u32 4294901760, %v1057_v58 }
 0x28d   : > { %1143 = vmatpush.msrb.mxu1 %v1007_v34  ;;  %1014 = vmatmul.f32.vlgmr.msrb.gmra.mxu2 %v1013_v53 }
 0x28e   : > { %1104 = vmatpush.msrb.mxu0 %v1063_v19  ;;  %1186 = vmatpush.msra.mxu2 %v1058_v20  ;;  %v1059_v40 = vsub.f32 %v1057_v58, %v1058_v20 }
 0x28f   : > { %1107 = vmatmul.f32.vlgmr.msrb.gmra.mxu0 %v1010_v37  ;;  %1147 = vmatmul.f32.vlgmr.msrb.gmra.mxu1 %v1011_v45 }
 0x290   : > { %1190 = vmatpush.msra.mxu2 %v1064_v8  ;;  %v1060_v52 = vand.u32 4294901760, %v1059_v40 }
 0x292   : > { %1061 = vmatpush.msrb.mxu3 %v1060_v52 }
 0x294   : > { %1067 = vmatpush.msrb.mxu3 %v1066_v48 }
 0x295   : > { %1022 = vmatmul.f32.gmra.mxu2 %v1021_v43  ;;  %1069 = vmatmul.f32.vlgmr.msrb.gmra.mxu3 %v2232_v54 }
 0x296   : > { %1223 = vmatpush.msra.mxu3 %v1005_v12 }
 0x297   : > { %1112 = vmatmul.f32.gmra.mxu0 %v1018_v15  ;;  %1153 = vmatmul.f32.gmra.mxu1 %v1019_v25 }
 0x298   : > { %1225 = vmatpush.msra.mxu3 %v1007_v34 }
 0x29d   : > { %1030 = vmatmul.f32.gmra.mxu2 %v1029_v59  ;;  %1073 = vmatmul.f32.gmra.mxu3 %v2239_v47 }
 0x29f   : > { %1117 = vmatmul.f32.gmra.mxu0 %v1026_v29  ;;  %1159 = vmatmul.f32.gmra.mxu1 %v1027_v2 }
 0x2a5   : > { %1038 = vmatmul.f32.gmra.mxu2 %v1037_v56  ;;  %1077 = vmatmul.f32.gmra.mxu3 %v1025_v26 }
 0x2a7   : > { %1122 = vmatmul.f32.gmra.mxu0 %v1034_v55  ;;  %1165 = vmatmul.f32.gmra.mxu1 %v1035_v32 }
 0x2ad   : > { %1081 = vmatmul.f32.gmra.mxu3 %v1033_v46  ;;  %1192 = vmatmul.f32.vlgmr.msra.gmra.mxu2 %v2232_v54 }
 0x2b5   : > { %1196 = vmatmul.f32.gmra.mxu2 %v2239_v47  ;;  %1227 = vmatmul.f32.vlgmr.msra.gmra.mxu3 %v2232_v54 }
 0x2bd   : > { %1200 = vmatmul.f32.gmra.mxu2 %v1025_v26  ;;  %1231 = vmatmul.f32.gmra.mxu3 %v2239_v47 }
 0x2c5   : > { %1204 = vmatmul.f32.gmra.mxu2 %v1033_v46  ;;  %1235 = vmatmul.f32.gmra.mxu3 %v1025_v26 }
 0x2cd   : > { %1239 = vmatmul.f32.gmra.mxu3 %v1033_v46 }
 0x30c   : > { %v1108_v39 = vpop.f32.mrf.mxu0  ;;  %v1148_v7 = vpop.f32.mrf.mxu1 }
 0x310   : > { %v1015_v22 = vpop.f32.mrf.mxu2 }
 0x314   : > { %v1113_v44 = vpop.f32.mrf.mxu0  ;;  %v1154_v61 = vpop.f32.mrf.mxu1 }
 0x318   : > { %v1023_v0 = vpop.f32.mrf.mxu2  ;;  %v1070_v23 = vpop.f32.mrf.mxu3 }
 0x319   : > { %v1071_v5 = vadd.f32 %v1070_v23, %v1015_v22 }
 0x31b   : > { %v1109_v42 = vadd.f32 %v1108_v39, %v1071_v5 }
 0x31c   : > { %v1118_v37 = vpop.f32.mrf.mxu0  ;;  %v1160_v9 = vpop.f32.mrf.mxu1 }
 0x31d   : > { %v1149_v54 = vadd.f32 %v1148_v7, %v1109_v42 }
 0x320   : > { %v1031_v24 = vpop.f32.mrf.mxu2  ;;  %v1074_v62 = vpop.f32.mrf.mxu3 }
 0x321   : > { %v1075_v31 = vadd.f32 %v1074_v62, %v1023_v0 }
 0x323   : > { %v1114_v3 = vadd.f32 %v1113_v44, %v1075_v31 }
 0x324   : > { %v1123_v16 = vpop.f32.mrf.mxu0  ;;  %v1166_v19 = vpop.f32.mrf.mxu1 }
 0x325   : > { %v1155_v4 = vadd.f32 %v1154_v61, %v1114_v3 }
 0x328   : > { %v1039_v57 = vpop.f32.mrf.mxu2  ;;  %v1078_v60 = vpop.f32.mrf.mxu3 }
 0x329   : > { %v1079_v38 = vadd.f32 %v1078_v60, %v1031_v24 }
 0x32b   : > { %v1119_v47 = vadd.f32 %v1118_v37, %v1079_v38 }
 0x32d   : > { %v1161_v10 = vadd.f32 %v1160_v9, %v1119_v47 }
 0x330   : > { %v1082_v27 = vpop.f32.mrf.mxu3  ;;  %v1193_v50 = vpop.f32.mrf.mxu2 }
 0x331   : > { %v1194_v30 = vadd.f32 %v1193_v50, %v1149_v54  ;;  %v1083_v14 = vadd.f32 %v1082_v27, %v1039_v57 }
 0x333   : > { %v1124_v15 = vadd.f32 %v1123_v16, %v1083_v14 }
 0x335   : > { %v1167_v12 = vadd.f32 %v1166_v19, %v1124_v15 }
 0x338   : > { %v1197_v35 = vpop.f32.mrf.mxu2  ;;  %v1228_v36 = vpop.f32.mrf.mxu3 }
 0x339   : > { %v1229_v63 = vadd.f32 %v1228_v36, %v1194_v30  ;;  %v1198_v1 = vadd.f32 %v1197_v35, %v1155_v4 }
 0x33b   : > { %1244 = vst.msk [vmem:[%s2261_s26] sm:$0xff] %vm1243_vm0, %v1229_v63 }
 0x340   : > { %v1232_v45 = vpop.f32.mrf.mxu3  ;;  %v1201_v49 = vpop.f32.mrf.mxu2 }
 0x341   : > { %v1233_v34 = vadd.f32 %v1232_v45, %v1198_v1  ;;  %v1202_v17 = vadd.f32 %v1201_v49, %v1161_v10 }
 0x343   : > { %1246 = vrot.lane.b32.xlu2 %v1233_v34, %s1663_s23 }
 0x348   : > { %v1236_v28 = vpop.f32.mrf.mxu3  ;;  %v1205_v11 = vpop.f32.mrf.mxu2 }
 0x349   : > { %v1237_v18 = vadd.f32 %v1236_v28, %v1202_v17  ;;  %v1206_v53 = vadd.f32 %v1205_v11, %v1167_v12 }
 0x34b   : > { %1252 = vrot.lane.b32.xlu0 %v1237_v18, %s1664_s11 }
 0x350   : > { %v1240_v25 = vpop.f32.mrf.mxu3 }
 0x351   : > { %v1241_v26 = vadd.f32 %v1240_v25, %v1206_v53 }
 0x353   : > { %1258 = vrot.lane.b32.xlu1 %v1241_v26, %s1665_s14 }
 0x39d   : > { %v1247_v58 = vpop.permute.xlu2 %1246 }
 0x39e   : > { %1250 = vst.msk [vmem:[%s2261_s26] sm:$0xff] %vm1249_vm1, %v1247_v58 }
 0x3bd   : > { %v1253_v8 = vpop.permute.xlu0 %1252 }
 0x3be   : > { %1256 = vst.msk [vmem:[%s2261_s26] sm:$0xff] %vm1255_vm2, %v1253_v8 }
 0x3c5   : > { %v1259_v13 = vpop.permute.xlu1 %1258 }
 0x3c6   : > { %1262 = vst.msk [vmem:[%s2261_s26] sm:$0xff] %vm1261_vm3, %v1259_v13 }
 0x3c7 PF: > { %s21_s25 = sadd.s32 1, %s1653_s25   ;;  %s2299_s20 = smov %s1637_s21 }
 0x3c8   : > { %p18_p2 = scmp.ge.s32.totalorder %s21_s25, 4   ;;  %s2300_s21 = smov %s1641_s22 }
 0x3c9   : > { %s2301_s22 = smov %s1777_s10  ;;  %s2302_s23 = smov %s1649_s24 }
 0x3ca   : > { %s2303_s24 = smov %s2305_s18  ;;  %20 = sbr.rel (!%p18_p2) target bundleno = 10 (0xa), region = 101 }
 0x3cf   :  { %1282 = vsyncpa [#allocation7], 1 }
 0x3d0   :  { %1284 = vsyncpa [#allocation7 + $0x1], 1 }
 0x3d1   :  { %1285 = vsyncpa [#allocation11], 1 }
 0x3d2   :  { %1287 = vsyncpa [#allocation11 + $0x1], 1 }
 0x3d3   :  { %1288 = vsyncpa [#allocation8], 1 }
 0x3d4   :  { %1290 = vsyncpa [#allocation8 + $0x1], 1 }

</bundles_post_ra>
